<compile_context>
chip_gen: v7x
topology: tpu7x:2x2x1
jax: 0.10.0
libtpu: 0.0.40
codegen_flags: <defaults>
</compile_context>

<pallas_src>
import jax
import jax.numpy as jnp
import numpy as np
from jax.experimental import pallas as pl
from jax.experimental.pallas import tpu as pltpu

NEG_SLOPE = 0.01                 # torch.nn.LeakyReLU default
MATMUL_DTYPE = jnp.float32       # jnp.bfloat16 on v6e/v7x for production sizes

# Tap order t = (dh+1)*3 + (dw+1); matches the im2col weight column order.
_TAPS = tuple((dh, dw) for dh in (-1, 0, 1) for dw in (-1, 0, 1))


def _leaky_relu(x):
    return jnp.where(x > 0, x, NEG_SLOPE * x)


def _make_convblock_kernel(N, H, W, C0, C1, C2):
    HW = H * W
    LANES = N * HW

    def kernel(x_ref, w_ref, mask_ref, o_ref, xcol_ref):
        # x_ref    : (N, C0, HW)    input images, channel-major, lane-flattened spatial
        # w_ref    : (3, C1, 9*C1)  fused im2col weights; k = (kh*3 + kw)*cin + ci
        #                           (conv0 uses columns [:9*C0], conv2 uses rows [:C2])
        # mask_ref : (9, LANES)     f32 'same'-padding masks per tap (1 = keep, 0 = pad)
        # o_ref    : (N, C2, HW)
        # xcol_ref : (9*C1, LANES)  persistent im2col staging scratch, reused by all convs

        def conv3x3_same(a, cin, w):
            """a: (cin, LANES) f32 activations. w: (cout, 9*cin). Returns (cout, LANES) f32."""
            for t, (dh, dw) in enumerate(_TAPS):
                if dh == 0 and dw == 0:
                    win = a
                else:
                    # Tap (dh, dw) reads pixel (h+dh, w+dw) == lane roll by -(dh*W + dw).
                    # All wrapped / row-crossing / image-crossing lanes are exactly the
                    # zero-padding positions, zeroed by the (finite-data) f32 mask.
                    shift = (-(dh * W + dw)) % LANES
                    win = pltpu.roll(a, shift=shift, axis=1) * mask_ref[t:t + 1, :]
                xcol_ref[t * cin:(t + 1) * cin, :] = win.astype(xcol_ref.dtype)
            # Single MXU matmul per conv on the staged im2col operand.
            # TODO(synk): a general ConvBlock (non-zero bias) would add a (cout, 1)
            # bias broadcast here; this config zeroes biases at __init__.
            return jnp.dot(w, xcol_ref[0:9 * cin, :],
                           preferred_element_type=jnp.float32)

        # Assemble conv0's (C0, N*HW) input from the per-image blocks: two tiny
        # lane-aligned copies; avoids any wrapper-side transpose or padded copy of x.
        parts = [x_ref[n] for n in range(N)]
        x = parts[0] if N == 1 else jnp.concatenate(parts, axis=1)

        a0 = _leaky_relu(conv3x3_same(x, C0, w_ref[0, :, :9 * C0]))   # conv0 -> LeakyReLU
        h1 = conv3x3_same(a0, C1, w_ref[1]) + a0                      # conv1 + skip {"1": 2}
        a1 = _leaky_relu(h1)
        y = conv3x3_same(a1, C1, w_ref[2, :C2, :])                    # conv2 (bias == 0)

        for n in range(N):                                            # lane-aligned slices
            o_ref[n] = y[:, n * HW:(n + 1) * HW].astype(o_ref.dtype)

    return kernel


def _hwio_to_im2col(w_hwio):
    """(3, 3, cin, cout) HWIO -> (cout, 9*cin) im2col weight; k = (kh*3 + kw)*cin + ci."""
    kh, kw, cin, cout = w_hwio.shape
    return jnp.transpose(w_hwio.astype(jnp.float32), (3, 0, 1, 2)).reshape(cout, kh * kw * cin)


def _build_tap_masks(N, H, W):
    """(9, N*H*W) f32 'same' zero-padding masks in the kernel's tap order."""
    HW = H * W
    lane = np.arange(N * HW)
    h = (lane % HW) // W
    w = lane % W
    rows = []
    for dh, dw in _TAPS:
        keep = np.ones(N * HW, dtype=bool)
        if dh == -1:
            keep &= h != 0
        elif dh == 1:
            keep &= h != H - 1
        if dw == -1:
            keep &= w != 0
        elif dw == 1:
            keep &= w != W - 1
        rows.append(keep.astype(np.float32))
    return jnp.asarray(np.stack(rows, axis=0))


def convblock_forward(x_nchw, w0, w1, w2):
    """ConvBlock forward. x_nchw: (N, C0, H, W) (PyTorch layout); weights in HWIO."""
    N, C0, H, W = x_nchw.shape
    C1 = w0.shape[-1]
    C2 = w2.shape[-1]
    HW = H * W
    LANES = N * HW
    KMAX = 9 * C1
    assert w1.shape[-2] == C1 and w2.shape[-2] == C1 and C0 <= C1 and C2 <= C1

    # NCHW -> (N, C, H*W) is a pure reshape: no transpose, no padded copy of x in HBM.
    x = x_nchw.reshape(N, C0, HW).astype(jnp.float32)

    # Fused im2col weights: a single small input (one DMA instead of three).
    w_all = jnp.zeros((3, C1, KMAX), MATMUL_DTYPE)
    w_all = w_all.at[0, :, :9 * C0].set(_hwio_to_im2col(w0).astype(MATMUL_DTYPE))
    w_all = w_all.at[1, :, :].set(_hwio_to_im2col(w1).astype(MATMUL_DTYPE))
    w_all = w_all.at[2, :C2, :].set(_hwio_to_im2col(w2).astype(MATMUL_DTYPE))

    masks = _build_tap_masks(N, H, W)                       # (9, LANES) f32, host-built

    # TODO(synk): for non-toy H*W, tile the spatial axis with a 1-row halo and size
    # tiles to v7x's 64 MiB VMEM (not v5e/v6e's 128 MiB); at 16x16 the whole problem
    # is a few hundred KiB so a single fused step is optimal on all generations.
    out = pl.pallas_call(
        _make_convblock_kernel(N, H, W, C0, C1, C2),
        out_shape=jax.ShapeDtypeStruct((N, C2, HW), jnp.float32),
        grid_spec=pltpu.PrefetchScalarGridSpec(
            num_scalar_prefetch=0,
            grid=(1,),                       # whole batch in one step (single-TC friendly)
            in_specs=[
                pl.BlockSpec((N, C0, HW), lambda i: (0, 0, 0)),
                pl.BlockSpec((3, C1, KMAX), lambda i: (0, 0, 0)),
                pl.BlockSpec((9, LANES), lambda i: (0, 0)),
            ],
            out_specs=pl.BlockSpec((N, C2, HW), lambda i: (0, 0, 0)),
            scratch_shapes=[
                pltpu.VMEM((KMAX, LANES), MATMUL_DTYPE),   # 144 KiB im2col staging scratch
            ],
        ),
        compiler_params=pltpu.CompilerParams(
            dimension_semantics=("arbitrary",),
        ),
    )(x, w_all, masks)

    # (N, C2, H*W) -> (N, C2, H, W): pure reshape back to the PyTorch NCHW convention.
    return out.reshape(N, C2, H, W)


def convblock_reference(x_nchw, w0, w1, w2):
    """Pure-JAX reference (same semantics via lax conv, full f32 precision)."""
    def conv(x, w):
        return jax.lax.conv_general_dilated(
            x, w, window_strides=(1, 1), padding="SAME",
            dimension_numbers=("NHWC", "HWIO", "NHWC"),
            precision=jax.lax.Precision.HIGHEST,
        )

    x = jnp.transpose(x_nchw, (0, 2, 3, 1)).astype(jnp.float32)
    a0 = _leaky_relu(conv(x, w0))
    h1 = conv(a0, w1) + a0
    a1 = _leaky_relu(h1)
    out = conv(a1, w2)
    return jnp.transpose(out, (0, 3, 1, 2))


if __name__ == "__main__":
    key = jax.random.PRNGKey(0)
    k_x, k_w0, k_w1, k_w2 = jax.random.split(key, 4)

    N, H, W = 2, 16, 16
    num_channels = [4, 8, 8, 4]
    C0, C1, _, C2 = num_channels

    # Deterministic synthetic parameters (HWIO). Biases are zero, exactly as the
    # module does `new_conv.bias.data[:] = 0` in __init__, so they are omitted.
    x = jax.random.normal(k_x, (N, C0, H, W), dtype=jnp.float32)
    w0 = 0.1 * jax.random.normal(k_w0, (3, 3, C0, C1), dtype=jnp.float32)
    w1 = 0.1 * jax.random.normal(k_w1, (3, 3, C1, C1), dtype=jnp.float32)
    w2 = 0.1 * jax.random.normal(k_w2, (3, 3, C1, C2), dtype=jnp.float32)

    out = jax.block_until_ready(convblock_forward(x, w0, w1, w2))
    ref = jax.block_until_ready(convblock_reference(x, w0, w1, w2))

    assert out.shape == (N, C2, H, W), out.shape
    # All-f32 path (kernel MXU f32 multi-pass vs HIGHEST-precision lax conv):
    # tight tolerance so layout/indexing regressions are actually caught.
    # (If MATMUL_DTYPE is switched to bfloat16, relax to ~rtol=2e-2, atol=5e-3.)
    np.testing.assert_allclose(np.asarray(out), np.asarray(ref), rtol=1e-3, atol=1e-4)

    print("KERNEL_OK")
</pallas_src>

<mosaic_0001>
module attributes {stable_mosaic.version = 11 : i64} {
  func.func @kernel(%arg0: i32, %arg1: memref<2x4x256xf32, #tpu.memory_space<vmem>>, %arg2: memref<3x8x72xf32, #tpu.memory_space<vmem>>, %arg3: memref<9x512xf32, #tpu.memory_space<vmem>>, %arg4: memref<2x4x256xf32, #tpu.memory_space<vmem>>, %arg5: memref<72x512xf32, #tpu.memory_space<vmem>>) attributes {dimension_semantics = [#tpu.dimension_semantics<arbitrary>], iteration_bounds = array<i64: 1>, scalar_prefetch = 0 : i64, scratch_operands = 1 : i64, tpu.core_type = #tpu.core_type<tc>, window_params = [{pipeline_mode = #tpu.pipeline_mode<synchronous>, transform_indices = @transform_0, window_bounds = array<i64: 2, 4, 256>}, {pipeline_mode = #tpu.pipeline_mode<synchronous>, transform_indices = @transform_1, window_bounds = array<i64: 3, 8, 72>}, {pipeline_mode = #tpu.pipeline_mode<synchronous>, transform_indices = @transform_2, window_bounds = array<i64: 9, 512>}, {pipeline_mode = #tpu.pipeline_mode<synchronous>, transform_indices = @transform_3, window_bounds = array<i64: 2, 4, 256>}]} {
    %c0 = arith.constant 0 : index
    %c0_0 = arith.constant 0 : index
    %c0_1 = arith.constant 0 : index
    %0 = vector.load %arg1[%c0, %c0_0, %c0_1] : memref<2x4x256xf32, #tpu.memory_space<vmem>>, vector<1x4x256xf32>
    %1 = vector.shape_cast %0 : vector<1x4x256xf32> to vector<4x256xf32>
    %c1 = arith.constant 1 : index
    %c0_2 = arith.constant 0 : index
    %c0_3 = arith.constant 0 : index
    %2 = vector.load %arg1[%c1, %c0_2, %c0_3] : memref<2x4x256xf32, #tpu.memory_space<vmem>>, vector<1x4x256xf32>
    %3 = vector.shape_cast %2 : vector<1x4x256xf32> to vector<4x256xf32>
    %4 = tpu.concatenate %1, %3 in 1 : vector<4x256xf32>, vector<4x256xf32> -> vector<4x512xf32>
    %c0_4 = arith.constant 0 : index
    %c0_5 = arith.constant 0 : index
    %c0_6 = arith.constant 0 : index
    %5 = vector.load %arg2[%c0_4, %c0_5, %c0_6] : memref<3x8x72xf32, #tpu.memory_space<vmem>>, vector<1x8x36xf32>
    %6 = vector.shape_cast %5 : vector<1x8x36xf32> to vector<8x36xf32>
    %c17_i32 = arith.constant 17 : i32
    %7 = tpu.dynamic_rotate %4 by %c17_i32 dim 1 : vector<4x512xf32>, i32 -> vector<4x512xf32>
    %c0_7 = arith.constant 0 : index
    %c0_8 = arith.constant 0 : index
    %8 = vector.load %arg3[%c0_7, %c0_8] : memref<9x512xf32, #tpu.memory_space<vmem>>, vector<1x512xf32>
    %9 = vector.broadcast %8 : vector<1x512xf32> to vector<4x512xf32>
    %10 = arith.mulf %7, %9 : vector<4x512xf32>
    %c0_9 = arith.constant 0 : index
    %c0_10 = arith.constant 0 : index
    %11 = vector.load %arg5[%c0_9, %c0_10] : memref<72x512xf32, #tpu.memory_space<vmem>>, vector<4x512xf32>
    tpu.vector_store %arg5[%c0_9, %c0_10], %10 {strides = array<i32>} : memref<72x512xf32, #tpu.memory_space<vmem>>, vector<4x512xf32>,
    %c16_i32 = arith.constant 16 : i32
    %12 = tpu.dynamic_rotate %4 by %c16_i32 dim 1 : vector<4x512xf32>, i32 -> vector<4x512xf32>
    %c1_11 = arith.constant 1 : index
    %c0_12 = arith.constant 0 : index
    %13 = vector.load %arg3[%c1_11, %c0_12] : memref<9x512xf32, #tpu.memory_space<vmem>>, vector<1x512xf32>
    %14 = vector.broadcast %13 : vector<1x512xf32> to vector<4x512xf32>
    %15 = arith.mulf %12, %14 : vector<4x512xf32>
    %c4 = arith.constant 4 : index
    %c0_13 = arith.constant 0 : index
    %16 = vector.load %arg5[%c4, %c0_13] : memref<72x512xf32, #tpu.memory_space<vmem>>, vector<4x512xf32>
    tpu.vector_store %arg5[%c4, %c0_13], %15 {strides = array<i32>} : memref<72x512xf32, #tpu.memory_space<vmem>>, vector<4x512xf32>,
    %c15_i32 = arith.constant 15 : i32
    %17 = tpu.dynamic_rotate %4 by %c15_i32 dim 1 : vector<4x512xf32>, i32 -> vector<4x512xf32>
    %c2 = arith.constant 2 : index
    %c0_14 = arith.constant 0 : index
    %18 = vector.load %arg3[%c2, %c0_14] : memref<9x512xf32, #tpu.memory_space<vmem>>, vector<1x512xf32>
    %19 = vector.broadcast %18 : vector<1x512xf32> to vector<4x512xf32>
    %20 = arith.mulf %17, %19 : vector<4x512xf32>
    %c8 = arith.constant 8 : index
    %c0_15 = arith.constant 0 : index
    %21 = vector.load %arg5[%c8, %c0_15] : memref<72x512xf32, #tpu.memory_space<vmem>>, vector<4x512xf32>
    tpu.vector_store %arg5[%c8, %c0_15], %20 {strides = array<i32>} : memref<72x512xf32, #tpu.memory_space<vmem>>, vector<4x512xf32>,
    %c1_i32 = arith.constant 1 : i32
    %22 = tpu.dynamic_rotate %4 by %c1_i32 dim 1 : vector<4x512xf32>, i32 -> vector<4x512xf32>
    %c3 = arith.constant 3 : index
    %c0_16 = arith.constant 0 : index
    %23 = vector.load %arg3[%c3, %c0_16] : memref<9x512xf32, #tpu.memory_space<vmem>>, vector<1x512xf32>
    %24 = vector.broadcast %23 : vector<1x512xf32> to vector<4x512xf32>
    %25 = arith.mulf %22, %24 : vector<4x512xf32>
    %c12 = arith.constant 12 : index
    %c0_17 = arith.constant 0 : index
    %26 = vector.load %arg5[%c12, %c0_17] : memref<72x512xf32, #tpu.memory_space<vmem>>, vector<4x512xf32>
    tpu.vector_store %arg5[%c12, %c0_17], %25 {strides = array<i32>} : memref<72x512xf32, #tpu.memory_space<vmem>>, vector<4x512xf32>,
    %c16 = arith.constant 16 : index
    %c0_18 = arith.constant 0 : index
    %27 = vector.load %arg5[%c16, %c0_18] : memref<72x512xf32, #tpu.memory_space<vmem>>, vector<4x512xf32>
    tpu.vector_store %arg5[%c16, %c0_18], %4 {strides = array<i32>} : memref<72x512xf32, #tpu.memory_space<vmem>>, vector<4x512xf32>,
    %c511_i32 = arith.constant 511 : i32
    %28 = tpu.dynamic_rotate %4 by %c511_i32 dim 1 : vector<4x512xf32>, i32 -> vector<4x512xf32>
    %c5 = arith.constant 5 : index
    %c0_19 = arith.constant 0 : index
    %29 = vector.load %arg3[%c5, %c0_19] : memref<9x512xf32, #tpu.memory_space<vmem>>, vector<1x512xf32>
    %30 = vector.broadcast %29 : vector<1x512xf32> to vector<4x512xf32>
    %31 = arith.mulf %28, %30 : vector<4x512xf32>
    %c20 = arith.constant 20 : index
    %c0_20 = arith.constant 0 : index
    %32 = vector.load %arg5[%c20, %c0_20] : memref<72x512xf32, #tpu.memory_space<vmem>>, vector<4x512xf32>
    tpu.vector_store %arg5[%c20, %c0_20], %31 {strides = array<i32>} : memref<72x512xf32, #tpu.memory_space<vmem>>, vector<4x512xf32>,
    %c497_i32 = arith.constant 497 : i32
    %33 = tpu.dynamic_rotate %4 by %c497_i32 dim 1 : vector<4x512xf32>, i32 -> vector<4x512xf32>
    %c6 = arith.constant 6 : index
    %c0_21 = arith.constant 0 : index
    %34 = vector.load %arg3[%c6, %c0_21] : memref<9x512xf32, #tpu.memory_space<vmem>>, vector<1x512xf32>
    %35 = vector.broadcast %34 : vector<1x512xf32> to vector<4x512xf32>
    %36 = arith.mulf %33, %35 : vector<4x512xf32>
    %c24 = arith.constant 24 : index
    %c0_22 = arith.constant 0 : index
    %37 = vector.load %arg5[%c24, %c0_22] : memref<72x512xf32, #tpu.memory_space<vmem>>, vector<4x512xf32>
    tpu.vector_store %arg5[%c24, %c0_22], %36 {strides = array<i32>} : memref<72x512xf32, #tpu.memory_space<vmem>>, vector<4x512xf32>,
    %c496_i32 = arith.constant 496 : i32
    %38 = tpu.dynamic_rotate %4 by %c496_i32 dim 1 : vector<4x512xf32>, i32 -> vector<4x512xf32>
    %c7 = arith.constant 7 : index
    %c0_23 = arith.constant 0 : index
    %39 = vector.load %arg3[%c7, %c0_23] : memref<9x512xf32, #tpu.memory_space<vmem>>, vector<1x512xf32>
    %40 = vector.broadcast %39 : vector<1x512xf32> to vector<4x512xf32>
    %41 = arith.mulf %38, %40 : vector<4x512xf32>
    %c28 = arith.constant 28 : index
    %c0_24 = arith.constant 0 : index
    %42 = vector.load %arg5[%c28, %c0_24] : memref<72x512xf32, #tpu.memory_space<vmem>>, vector<4x512xf32>
    tpu.vector_store %arg5[%c28, %c0_24], %41 {strides = array<i32>} : memref<72x512xf32, #tpu.memory_space<vmem>>, vector<4x512xf32>,
    %c495_i32 = arith.constant 495 : i32
    %43 = tpu.dynamic_rotate %4 by %c495_i32 dim 1 : vector<4x512xf32>, i32 -> vector<4x512xf32>
    %c8_25 = arith.constant 8 : index
    %c0_26 = arith.constant 0 : index
    %44 = vector.load %arg3[%c8_25, %c0_26] : memref<9x512xf32, #tpu.memory_space<vmem>>, vector<1x512xf32>
    %45 = vector.broadcast %44 : vector<1x512xf32> to vector<4x512xf32>
    %46 = arith.mulf %43, %45 : vector<4x512xf32>
    %c32 = arith.constant 32 : index
    %c0_27 = arith.constant 0 : index
    %47 = vector.load %arg5[%c32, %c0_27] : memref<72x512xf32, #tpu.memory_space<vmem>>, vector<4x512xf32>
    tpu.vector_store %arg5[%c32, %c0_27], %46 {strides = array<i32>} : memref<72x512xf32, #tpu.memory_space<vmem>>, vector<4x512xf32>,
    %c0_28 = arith.constant 0 : index
    %c0_29 = arith.constant 0 : index
    %48 = vector.load %arg5[%c0_28, %c0_29] : memref<72x512xf32, #tpu.memory_space<vmem>>, vector<36x512xf32>
    %cst = arith.constant dense<0.000000e+00> : vector<8x512xf32>
    %49 = tpu.matmul %6, %48, %cst {dimension_numbers = #tpu.dot_dimension_numbers<[1], [0], [0], [1], [0, 0, 1, 1], [], []>} : vector<8x36xf32>, vector<36x512xf32>, vector<8x512xf32> -> vector<8x512xf32>
    %cst_30 = arith.constant 0.000000e+00 : f32
    %50 = vector.broadcast %cst_30 : f32 to vector<8x512xf32>
    %51 = arith.cmpf ogt, %49, %50 : vector<8x512xf32>
    %cst_31 = arith.constant 0.00999999977 : f32
    %52 = vector.broadcast %cst_31 : f32 to vector<8x512xf32>
    %53 = arith.mulf %52, %49 : vector<8x512xf32>
    %54 = arith.select %51, %49, %53 : vector<8x512xi1>, vector<8x512xf32>
    %c1_32 = arith.constant 1 : index
    %c0_33 = arith.constant 0 : index
    %c0_34 = arith.constant 0 : index
    %55 = vector.load %arg2[%c1_32, %c0_33, %c0_34] : memref<3x8x72xf32, #tpu.memory_space<vmem>>, vector<1x8x72xf32>
    %56 = vector.shape_cast %55 : vector<1x8x72xf32> to vector<8x72xf32>
    %c17_i32_35 = arith.constant 17 : i32
    %57 = tpu.dynamic_rotate %54 by %c17_i32_35 dim 1 : vector<8x512xf32>, i32 -> vector<8x512xf32>
    %c0_36 = arith.constant 0 : index
    %c0_37 = arith.constant 0 : index
    %58 = vector.load %arg3[%c0_36, %c0_37] : memref<9x512xf32, #tpu.memory_space<vmem>>, vector<1x512xf32>
    %59 = vector.broadcast %58 : vector<1x512xf32> to vector<8x512xf32>
    %60 = arith.mulf %57, %59 : vector<8x512xf32>
    %c0_38 = arith.constant 0 : index
    %c0_39 = arith.constant 0 : index
    %61 = vector.load %arg5[%c0_38, %c0_39] : memref<72x512xf32, #tpu.memory_space<vmem>>, vector<8x512xf32>
    tpu.vector_store %arg5[%c0_38, %c0_39], %60 {strides = array<i32>} : memref<72x512xf32, #tpu.memory_space<vmem>>, vector<8x512xf32>,
    %c16_i32_40 = arith.constant 16 : i32
    %62 = tpu.dynamic_rotate %54 by %c16_i32_40 dim 1 : vector<8x512xf32>, i32 -> vector<8x512xf32>
    %c1_41 = arith.constant 1 : index
    %c0_42 = arith.constant 0 : index
    %63 = vector.load %arg3[%c1_41, %c0_42] : memref<9x512xf32, #tpu.memory_space<vmem>>, vector<1x512xf32>
    %64 = vector.broadcast %63 : vector<1x512xf32> to vector<8x512xf32>
    %65 = arith.mulf %62, %64 : vector<8x512xf32>
    %c8_43 = arith.constant 8 : index
    %c0_44 = arith.constant 0 : index
    %66 = vector.load %arg5[%c8_43, %c0_44] : memref<72x512xf32, #tpu.memory_space<vmem>>, vector<8x512xf32>
    tpu.vector_store %arg5[%c8_43, %c0_44], %65 {strides = array<i32>} : memref<72x512xf32, #tpu.memory_space<vmem>>, vector<8x512xf32>,
    %c15_i32_45 = arith.constant 15 : i32
    %67 = tpu.dynamic_rotate %54 by %c15_i32_45 dim 1 : vector<8x512xf32>, i32 -> vector<8x512xf32>
    %c2_46 = arith.constant 2 : index
    %c0_47 = arith.constant 0 : index
    %68 = vector.load %arg3[%c2_46, %c0_47] : memref<9x512xf32, #tpu.memory_space<vmem>>, vector<1x512xf32>
    %69 = vector.broadcast %68 : vector<1x512xf32> to vector<8x512xf32>
    %70 = arith.mulf %67, %69 : vector<8x512xf32>
    %c16_48 = arith.constant 16 : index
    %c0_49 = arith.constant 0 : index
    %71 = vector.load %arg5[%c16_48, %c0_49] : memref<72x512xf32, #tpu.memory_space<vmem>>, vector<8x512xf32>
    tpu.vector_store %arg5[%c16_48, %c0_49], %70 {strides = array<i32>} : memref<72x512xf32, #tpu.memory_space<vmem>>, vector<8x512xf32>,
    %c1_i32_50 = arith.constant 1 : i32
    %72 = tpu.dynamic_rotate %54 by %c1_i32_50 dim 1 : vector<8x512xf32>, i32 -> vector<8x512xf32>
    %c3_51 = arith.constant 3 : index
    %c0_52 = arith.constant 0 : index
    %73 = vector.load %arg3[%c3_51, %c0_52] : memref<9x512xf32, #tpu.memory_space<vmem>>, vector<1x512xf32>
    %74 = vector.broadcast %73 : vector<1x512xf32> to vector<8x512xf32>
    %75 = arith.mulf %72, %74 : vector<8x512xf32>
    %c24_53 = arith.constant 24 : index
    %c0_54 = arith.constant 0 : index
    %76 = vector.load %arg5[%c24_53, %c0_54] : memref<72x512xf32, #tpu.memory_space<vmem>>, vector<8x512xf32>
    tpu.vector_store %arg5[%c24_53, %c0_54], %75 {strides = array<i32>} : memref<72x512xf32, #tpu.memory_space<vmem>>, vector<8x512xf32>,
    %c32_55 = arith.constant 32 : index
    %c0_56 = arith.constant 0 : index
    %77 = vector.load %arg5[%c32_55, %c0_56] : memref<72x512xf32, #tpu.memory_space<vmem>>, vector<8x512xf32>
    tpu.vector_store %arg5[%c32_55, %c0_56], %54 {strides = array<i32>} : memref<72x512xf32, #tpu.memory_space<vmem>>, vector<8x512xf32>,
    %c511_i32_57 = arith.constant 511 : i32
    %78 = tpu.dynamic_rotate %54 by %c511_i32_57 dim 1 : vector<8x512xf32>, i32 -> vector<8x512xf32>
    %c5_58 = arith.constant 5 : index
    %c0_59 = arith.constant 0 : index
    %79 = vector.load %arg3[%c5_58, %c0_59] : memref<9x512xf32, #tpu.memory_space<vmem>>, vector<1x512xf32>
    %80 = vector.broadcast %79 : vector<1x512xf32> to vector<8x512xf32>
    %81 = arith.mulf %78, %80 : vector<8x512xf32>
    %c40 = arith.constant 40 : index
    %c0_60 = arith.constant 0 : index
    %82 = vector.load %arg5[%c40, %c0_60] : memref<72x512xf32, #tpu.memory_space<vmem>>, vector<8x512xf32>
    tpu.vector_store %arg5[%c40, %c0_60], %81 {strides = array<i32>} : memref<72x512xf32, #tpu.memory_space<vmem>>, vector<8x512xf32>,
    %c497_i32_61 = arith.constant 497 : i32
    %83 = tpu.dynamic_rotate %54 by %c497_i32_61 dim 1 : vector<8x512xf32>, i32 -> vector<8x512xf32>
    %c6_62 = arith.constant 6 : index
    %c0_63 = arith.constant 0 : index
    %84 = vector.load %arg3[%c6_62, %c0_63] : memref<9x512xf32, #tpu.memory_space<vmem>>, vector<1x512xf32>
    %85 = vector.broadcast %84 : vector<1x512xf32> to vector<8x512xf32>
    %86 = arith.mulf %83, %85 : vector<8x512xf32>
    %c48 = arith.constant 48 : index
    %c0_64 = arith.constant 0 : index
    %87 = vector.load %arg5[%c48, %c0_64] : memref<72x512xf32, #tpu.memory_space<vmem>>, vector<8x512xf32>
    tpu.vector_store %arg5[%c48, %c0_64], %86 {strides = array<i32>} : memref<72x512xf32, #tpu.memory_space<vmem>>, vector<8x512xf32>,
    %c496_i32_65 = arith.constant 496 : i32
    %88 = tpu.dynamic_rotate %54 by %c496_i32_65 dim 1 : vector<8x512xf32>, i32 -> vector<8x512xf32>
    %c7_66 = arith.constant 7 : index
    %c0_67 = arith.constant 0 : index
    %89 = vector.load %arg3[%c7_66, %c0_67] : memref<9x512xf32, #tpu.memory_space<vmem>>, vector<1x512xf32>
    %90 = vector.broadcast %89 : vector<1x512xf32> to vector<8x512xf32>
    %91 = arith.mulf %88, %90 : vector<8x512xf32>
    %c56 = arith.constant 56 : index
    %c0_68 = arith.constant 0 : index
    %92 = vector.load %arg5[%c56, %c0_68] : memref<72x512xf32, #tpu.memory_space<vmem>>, vector<8x512xf32>
    tpu.vector_store %arg5[%c56, %c0_68], %91 {strides = array<i32>} : memref<72x512xf32, #tpu.memory_space<vmem>>, vector<8x512xf32>,
    %c495_i32_69 = arith.constant 495 : i32
    %93 = tpu.dynamic_rotate %54 by %c495_i32_69 dim 1 : vector<8x512xf32>, i32 -> vector<8x512xf32>
    %c8_70 = arith.constant 8 : index
    %c0_71 = arith.constant 0 : index
    %94 = vector.load %arg3[%c8_70, %c0_71] : memref<9x512xf32, #tpu.memory_space<vmem>>, vector<1x512xf32>
    %95 = vector.broadcast %94 : vector<1x512xf32> to vector<8x512xf32>
    %96 = arith.mulf %93, %95 : vector<8x512xf32>
    %c64 = arith.constant 64 : index
    %c0_72 = arith.constant 0 : index
    %97 = vector.load %arg5[%c64, %c0_72] : memref<72x512xf32, #tpu.memory_space<vmem>>, vector<8x512xf32>
    tpu.vector_store %arg5[%c64, %c0_72], %96 {strides = array<i32>} : memref<72x512xf32, #tpu.memory_space<vmem>>, vector<8x512xf32>,
    %c0_73 = arith.constant 0 : index
    %c0_74 = arith.constant 0 : index
    %98 = vector.load %arg5[%c0_73, %c0_74] : memref<72x512xf32, #tpu.memory_space<vmem>>, vector<72x512xf32>
    %cst_75 = arith.constant dense<0.000000e+00> : vector<8x512xf32>
    %99 = tpu.matmul %56, %98, %cst_75 {dimension_numbers = #tpu.dot_dimension_numbers<[1], [0], [0], [1], [0, 0, 1, 1], [], []>} : vector<8x72xf32>, vector<72x512xf32>, vector<8x512xf32> -> vector<8x512xf32>
    %100 = arith.addf %99, %54 : vector<8x512xf32>
    %cst_76 = arith.constant 0.000000e+00 : f32
    %101 = vector.broadcast %cst_76 : f32 to vector<8x512xf32>
    %102 = arith.cmpf ogt, %100, %101 : vector<8x512xf32>
    %cst_77 = arith.constant 0.00999999977 : f32
    %103 = vector.broadcast %cst_77 : f32 to vector<8x512xf32>
    %104 = arith.mulf %103, %100 : vector<8x512xf32>
    %105 = arith.select %102, %100, %104 : vector<8x512xi1>, vector<8x512xf32>
    %c2_78 = arith.constant 2 : index
    %c0_79 = arith.constant 0 : index
    %c0_80 = arith.constant 0 : index
    %106 = vector.load %arg2[%c2_78, %c0_79, %c0_80] : memref<3x8x72xf32, #tpu.memory_space<vmem>>, vector<1x4x72xf32>
    %107 = vector.shape_cast %106 : vector<1x4x72xf32> to vector<4x72xf32>
    %c17_i32_81 = arith.constant 17 : i32
    %108 = tpu.dynamic_rotate %105 by %c17_i32_81 dim 1 : vector<8x512xf32>, i32 -> vector<8x512xf32>
    %c0_82 = arith.constant 0 : index
    %c0_83 = arith.constant 0 : index
    %109 = vector.load %arg3[%c0_82, %c0_83] : memref<9x512xf32, #tpu.memory_space<vmem>>, vector<1x512xf32>
    %110 = vector.broadcast %109 : vector<1x512xf32> to vector<8x512xf32>
    %111 = arith.mulf %108, %110 : vector<8x512xf32>
    %c0_84 = arith.constant 0 : index
    %c0_85 = arith.constant 0 : index
    %112 = vector.load %arg5[%c0_84, %c0_85] : memref<72x512xf32, #tpu.memory_space<vmem>>, vector<8x512xf32>
    tpu.vector_store %arg5[%c0_84, %c0_85], %111 {strides = array<i32>} : memref<72x512xf32, #tpu.memory_space<vmem>>, vector<8x512xf32>,
    %c16_i32_86 = arith.constant 16 : i32
    %113 = tpu.dynamic_rotate %105 by %c16_i32_86 dim 1 : vector<8x512xf32>, i32 -> vector<8x512xf32>
    %c1_87 = arith.constant 1 : index
    %c0_88 = arith.constant 0 : index
    %114 = vector.load %arg3[%c1_87, %c0_88] : memref<9x512xf32, #tpu.memory_space<vmem>>, vector<1x512xf32>
    %115 = vector.broadcast %114 : vector<1x512xf32> to vector<8x512xf32>
    %116 = arith.mulf %113, %115 : vector<8x512xf32>
    %c8_89 = arith.constant 8 : index
    %c0_90 = arith.constant 0 : index
    %117 = vector.load %arg5[%c8_89, %c0_90] : memref<72x512xf32, #tpu.memory_space<vmem>>, vector<8x512xf32>
    tpu.vector_store %arg5[%c8_89, %c0_90], %116 {strides = array<i32>} : memref<72x512xf32, #tpu.memory_space<vmem>>, vector<8x512xf32>,
    %c15_i32_91 = arith.constant 15 : i32
    %118 = tpu.dynamic_rotate %105 by %c15_i32_91 dim 1 : vector<8x512xf32>, i32 -> vector<8x512xf32>
    %c2_92 = arith.constant 2 : index
    %c0_93 = arith.constant 0 : index
    %119 = vector.load %arg3[%c2_92, %c0_93] : memref<9x512xf32, #tpu.memory_space<vmem>>, vector<1x512xf32>
    %120 = vector.broadcast %119 : vector<1x512xf32> to vector<8x512xf32>
    %121 = arith.mulf %118, %120 : vector<8x512xf32>
    %c16_94 = arith.constant 16 : index
    %c0_95 = arith.constant 0 : index
    %122 = vector.load %arg5[%c16_94, %c0_95] : memref<72x512xf32, #tpu.memory_space<vmem>>, vector<8x512xf32>
    tpu.vector_store %arg5[%c16_94, %c0_95], %121 {strides = array<i32>} : memref<72x512xf32, #tpu.memory_space<vmem>>, vector<8x512xf32>,
    %c1_i32_96 = arith.constant 1 : i32
    %123 = tpu.dynamic_rotate %105 by %c1_i32_96 dim 1 : vector<8x512xf32>, i32 -> vector<8x512xf32>
    %c3_97 = arith.constant 3 : index
    %c0_98 = arith.constant 0 : index
    %124 = vector.load %arg3[%c3_97, %c0_98] : memref<9x512xf32, #tpu.memory_space<vmem>>, vector<1x512xf32>
    %125 = vector.broadcast %124 : vector<1x512xf32> to vector<8x512xf32>
    %126 = arith.mulf %123, %125 : vector<8x512xf32>
    %c24_99 = arith.constant 24 : index
    %c0_100 = arith.constant 0 : index
    %127 = vector.load %arg5[%c24_99, %c0_100] : memref<72x512xf32, #tpu.memory_space<vmem>>, vector<8x512xf32>
    tpu.vector_store %arg5[%c24_99, %c0_100], %126 {strides = array<i32>} : memref<72x512xf32, #tpu.memory_space<vmem>>, vector<8x512xf32>,
    %c32_101 = arith.constant 32 : index
    %c0_102 = arith.constant 0 : index
    %128 = vector.load %arg5[%c32_101, %c0_102] : memref<72x512xf32, #tpu.memory_space<vmem>>, vector<8x512xf32>
    tpu.vector_store %arg5[%c32_101, %c0_102], %105 {strides = array<i32>} : memref<72x512xf32, #tpu.memory_space<vmem>>, vector<8x512xf32>,
    %c511_i32_103 = arith.constant 511 : i32
    %129 = tpu.dynamic_rotate %105 by %c511_i32_103 dim 1 : vector<8x512xf32>, i32 -> vector<8x512xf32>
    %c5_104 = arith.constant 5 : index
    %c0_105 = arith.constant 0 : index
    %130 = vector.load %arg3[%c5_104, %c0_105] : memref<9x512xf32, #tpu.memory_space<vmem>>, vector<1x512xf32>
    %131 = vector.broadcast %130 : vector<1x512xf32> to vector<8x512xf32>
    %132 = arith.mulf %129, %131 : vector<8x512xf32>
    %c40_106 = arith.constant 40 : index
    %c0_107 = arith.constant 0 : index
    %133 = vector.load %arg5[%c40_106, %c0_107] : memref<72x512xf32, #tpu.memory_space<vmem>>, vector<8x512xf32>
    tpu.vector_store %arg5[%c40_106, %c0_107], %132 {strides = array<i32>} : memref<72x512xf32, #tpu.memory_space<vmem>>, vector<8x512xf32>,
    %c497_i32_108 = arith.constant 497 : i32
    %134 = tpu.dynamic_rotate %105 by %c497_i32_108 dim 1 : vector<8x512xf32>, i32 -> vector<8x512xf32>
    %c6_109 = arith.constant 6 : index
    %c0_110 = arith.constant 0 : index
    %135 = vector.load %arg3[%c6_109, %c0_110] : memref<9x512xf32, #tpu.memory_space<vmem>>, vector<1x512xf32>
    %136 = vector.broadcast %135 : vector<1x512xf32> to vector<8x512xf32>
    %137 = arith.mulf %134, %136 : vector<8x512xf32>
    %c48_111 = arith.constant 48 : index
    %c0_112 = arith.constant 0 : index
    %138 = vector.load %arg5[%c48_111, %c0_112] : memref<72x512xf32, #tpu.memory_space<vmem>>, vector<8x512xf32>
    tpu.vector_store %arg5[%c48_111, %c0_112], %137 {strides = array<i32>} : memref<72x512xf32, #tpu.memory_space<vmem>>, vector<8x512xf32>,
    %c496_i32_113 = arith.constant 496 : i32
    %139 = tpu.dynamic_rotate %105 by %c496_i32_113 dim 1 : vector<8x512xf32>, i32 -> vector<8x512xf32>
    %c7_114 = arith.constant 7 : index
    %c0_115 = arith.constant 0 : index
    %140 = vector.load %arg3[%c7_114, %c0_115] : memref<9x512xf32, #tpu.memory_space<vmem>>, vector<1x512xf32>
    %141 = vector.broadcast %140 : vector<1x512xf32> to vector<8x512xf32>
    %142 = arith.mulf %139, %141 : vector<8x512xf32>
    %c56_116 = arith.constant 56 : index
    %c0_117 = arith.constant 0 : index
    %143 = vector.load %arg5[%c56_116, %c0_117] : memref<72x512xf32, #tpu.memory_space<vmem>>, vector<8x512xf32>
    tpu.vector_store %arg5[%c56_116, %c0_117], %142 {strides = array<i32>} : memref<72x512xf32, #tpu.memory_space<vmem>>, vector<8x512xf32>,
    %c495_i32_118 = arith.constant 495 : i32
    %144 = tpu.dynamic_rotate %105 by %c495_i32_118 dim 1 : vector<8x512xf32>, i32 -> vector<8x512xf32>
    %c8_119 = arith.constant 8 : index
    %c0_120 = arith.constant 0 : index
    %145 = vector.load %arg3[%c8_119, %c0_120] : memref<9x512xf32, #tpu.memory_space<vmem>>, vector<1x512xf32>
    %146 = vector.broadcast %145 : vector<1x512xf32> to vector<8x512xf32>
    %147 = arith.mulf %144, %146 : vector<8x512xf32>
    %c64_121 = arith.constant 64 : index
    %c0_122 = arith.constant 0 : index
    %148 = vector.load %arg5[%c64_121, %c0_122] : memref<72x512xf32, #tpu.memory_space<vmem>>, vector<8x512xf32>
    tpu.vector_store %arg5[%c64_121, %c0_122], %147 {strides = array<i32>} : memref<72x512xf32, #tpu.memory_space<vmem>>, vector<8x512xf32>,
    %c0_123 = arith.constant 0 : index
    %c0_124 = arith.constant 0 : index
    %149 = vector.load %arg5[%c0_123, %c0_124] : memref<72x512xf32, #tpu.memory_space<vmem>>, vector<72x512xf32>
    %cst_125 = arith.constant dense<0.000000e+00> : vector<4x512xf32>
    %150 = tpu.matmul %107, %149, %cst_125 {dimension_numbers = #tpu.dot_dimension_numbers<[1], [0], [0], [1], [0, 0, 1, 1], [], []>} : vector<4x72xf32>, vector<72x512xf32>, vector<4x512xf32> -> vector<4x512xf32>
    %151 = vector.extract_strided_slice %150 {offsets = [0, 0], sizes = [4, 256], strides = [1, 1]} : vector<4x512xf32> to vector<4x256xf32>
    %c0_126 = arith.constant 0 : index
    %c0_127 = arith.constant 0 : index
    %c0_128 = arith.constant 0 : index
    %152 = vector.load %arg4[%c0_126, %c0_127, %c0_128] : memref<2x4x256xf32, #tpu.memory_space<vmem>>, vector<1x4x256xf32>
    %153 = vector.shape_cast %152 : vector<1x4x256xf32> to vector<4x256xf32>
    %154 = vector.shape_cast %151 : vector<4x256xf32> to vector<1x4x256xf32>
    tpu.vector_store %arg4[%c0_126, %c0_127, %c0_128], %154 {strides = array<i32>} : memref<2x4x256xf32, #tpu.memory_space<vmem>>, vector<1x4x256xf32>,
    %155 = vector.extract_strided_slice %150 {offsets = [0, 256], sizes = [4, 256], strides = [1, 1]} : vector<4x512xf32> to vector<4x256xf32>
    %c1_129 = arith.constant 1 : index
    %c0_130 = arith.constant 0 : index
    %c0_131 = arith.constant 0 : index
    %156 = vector.load %arg4[%c1_129, %c0_130, %c0_131] : memref<2x4x256xf32, #tpu.memory_space<vmem>>, vector<1x4x256xf32>
    %157 = vector.shape_cast %156 : vector<1x4x256xf32> to vector<4x256xf32>
    %158 = vector.shape_cast %155 : vector<4x256xf32> to vector<1x4x256xf32>
    tpu.vector_store %arg4[%c1_129, %c0_130, %c0_131], %158 {strides = array<i32>} : memref<2x4x256xf32, #tpu.memory_space<vmem>>, vector<1x4x256xf32>,
    return
  }
  func.func @transform_0(%arg0: i32) -> (i32, i32, i32) {
    %c0_i32 = arith.constant 0 : i32
    %c0_i32_0 = arith.constant 0 : i32
    %c0_i32_1 = arith.constant 0 : i32
    %c0_i32_2 = arith.constant 0 : i32
    return %c0_i32, %c0_i32_0, %c0_i32_1 : i32, i32, i32
  }
  func.func @transform_1(%arg0: i32) -> (i32, i32, i32) {
    %c0_i32 = arith.constant 0 : i32
    %c0_i32_0 = arith.constant 0 : i32
    %c0_i32_1 = arith.constant 0 : i32
    %c0_i32_2 = arith.constant 0 : i32
    return %c0_i32, %c0_i32_0, %c0_i32_1 : i32, i32, i32
  }
  func.func @transform_2(%arg0: i32) -> (i32, i32) {
    %c0_i32 = arith.constant 0 : i32
    %c0_i32_0 = arith.constant 0 : i32
    %c0_i32_1 = arith.constant 0 : i32
    return %c0_i32, %c0_i32_0 : i32, i32
  }
  func.func @transform_3(%arg0: i32) -> (i32, i32, i32) {
    %c0_i32 = arith.constant 0 : i32
    %c0_i32_0 = arith.constant 0 : i32
    %c0_i32_1 = arith.constant 0 : i32
    %c0_i32_2 = arith.constant 0 : i32
    return %c0_i32, %c0_i32_0, %c0_i32_1 : i32, i32, i32
  }
}

</mosaic_0001>

<bundles_post_ra>
// kernel: tpu_custom_call.1
= control target key start
LH: loop header
LB: loop body
LE: loop exit
PB: predicated region body
PF: predicated region fallthrough
CT: control target
= control target key end

     0   :  { %8 = vsyncpa [#allocation4], 0  ;;  %s2562_s0 = inlined_call_operand.hbm [shape: f32[2,4,256], index: 0, kind: input, shape index: {}]   ;;  %s2563_s1 = inlined_call_operand.hbm [shape: f32[3,8,72], index: 1, kind: input, shape index: {}]   ;;  %s2564_s2 = inlined_call_operand.hbm [shape: f32[9,512], index: 2, kind: input, shape index: {}]   ;;  %s2565_s3 = inlined_call_operand.hbm [shape: f32[2,4,256], index: 3, kind: output, shape index: {}]  }
   0x1   :  { %9 = vsyncpa [#allocation7], 0 }
   0x2   :  { %10 = vsyncpa [#allocation5], 0  ;;  %s1953_s12 = smov [#allocation6]   ;;  %s1954_s14 = smov [#allocation3]  }
   0x3   :  { %s28_s13 = sshll.u32 %s1953_s12, 4  ;;  %s16_s15 = sshll.u32 %s1954_s14, 4  ;;  %s29_s13 = int_to_ptr.vmem [resolvable:$true] %s28_s13  ;;  %s1990_s15 = int_to_ptr.vmem [resolvable:$true] %s16_s15 }
   0x4   :  { %s1859_s18 = scalar_lea.hbm %s2563_s1, 384 }
   0x5   :  { %p1860_p0 = scmp.ne.s32.totalorder %s2563_s1, %s1859_s18  ;;  %p1863_p1 = scmp.lt.u32.totalorder %s1859_s18, %s2563_s1 }
   0x7   :  { %p1865_p2 = pnand %p1863_p1, %p1860_p0 }
   0x9   :  { %1868 = shalt.err (!%p1865_p2)
}
   0xa   :  { %s1869_s23 = scalar_lea.vmem %s29_s13, 384  ;;  %p1874_p4 = scmp.lt.s32.totalorder %s29_s13, %s29_s13 }
   0xb   :  { %p1870_p3 = scmp.ne.s32.totalorder %s29_s13, %s1869_s23  ;;  %p1875_p5 = scmp.lt.s32.totalorder %s1869_s23, %s1869_s23 }
   0xd   :  { %p1876_p6 = por %p1875_p5, %p1874_p4 }
   0xf   :  { %p1877_p7 = pnand %p1876_p6, %p1870_p3 }
  0x11   :  { %1880 = shalt.err (!%p1877_p7)
}
  0x12   :  { %s1955_s24 = smov 128   ;;  %s1956_s25 = smov 8  }
  0x13   :  { %34 = dma.hbm_to_vmem [thread:$0]  %s2563_s1, 384, %s29_s13, [#allocation7], %s1955_s24, %s1955_s24, %s1956_s25  }
  0x14   :  { %s1881_s30 = scalar_lea.hbm %s2562_s0, 256 }
  0x15   :  { %p1882_p8 = scmp.ne.s32.totalorder %s2562_s0, %s1881_s30  ;;  %p1885_p9 = scmp.lt.u32.totalorder %s1881_s30, %s2562_s0 }
  0x17   :  { %p1887_p10 = pnand %p1885_p9, %p1882_p8 }
  0x19   :  { %1890 = shalt.err (!%p1887_p10)
}
  0x1a   :  { %s1891_s8 = scalar_lea.vmem %s1990_s15, 256  ;;  %p1896_p12 = scmp.lt.s32.totalorder %s1990_s15, %s1990_s15 }
  0x1b   :  { %p1892_p11 = scmp.ne.s32.totalorder %s1990_s15, %s1891_s8  ;;  %p1897_p13 = scmp.lt.s32.totalorder %s1891_s8, %s1891_s8 }
  0x1d   :  { %p1898_p0 = por %p1897_p13, %p1896_p12 }
  0x1f   :  { %p1899_p1 = pnand %p1898_p0, %p1892_p11 }
  0x21   :  { %1902 = shalt.err (!%p1899_p1)
}
  0x22   :  { %22 = dma.hbm_to_vmem [thread:$0]  %s2562_s0, 256, %s1990_s15, [#allocation4], %s1955_s24, %s1955_s24, %s1956_s25  }
  0x23   :  { %s1957_s10 = smov [#allocation8]   ;;  %s1903_s14 = scalar_lea.hbm %s2564_s2, 1024 }
  0x24   :  { %s40_s11 = sshll.u32 %s1957_s10, 4  ;;  %p1904_p2 = scmp.ne.s32.totalorder %s2564_s2, %s1903_s14  ;;  %s41_s11 = int_to_ptr.vmem [resolvable:$true] %s40_s11 }
  0x25   :  { %p1907_p3 = scmp.lt.u32.totalorder %s1903_s14, %s2564_s2 }
  0x27   :  { %p1909_p4 = pnand %p1907_p3, %p1904_p2 }
  0x29   :  { %1912 = shalt.err (!%p1909_p4)
}
  0x2a   :  { %s1913_s20 = scalar_lea.vmem %s41_s11, 1024  ;;  %p1918_p6 = scmp.lt.s32.totalorder %s41_s11, %s41_s11 }
  0x2b   :  { %p1914_p5 = scmp.ne.s32.totalorder %s41_s11, %s1913_s20  ;;  %p1919_p7 = scmp.lt.s32.totalorder %s1913_s20, %s1913_s20 }
  0x2d   :  { %p1920_p8 = por %p1919_p7, %p1918_p6 }
  0x2f   :  { %p1921_p9 = pnand %p1920_p8, %p1914_p5 }
  0x31   :  { %1924 = shalt.err (!%p1921_p9)
}
  0x32   :  { %s1958_s0 = smov 512   ;;  %s1959_s15 = smov 32  }
  0x33   :  { %46 = dma.hbm_to_vmem [thread:$0]  %s2564_s2, 1024, %s41_s11, [#allocation7], %s1958_s0, %s1958_s0, %s1959_s15  }
  0x34   :  { %1947 = dma.done.wait [#allocation4], 256  }
  0x35   :  { %1948 = vsyncadd [#allocation4], 4294967040 }
  0x36   :  { %1949 = dma.done.wait [#allocation7], 1408  }
  0x37   :  { %1950 = vsyncadd [#allocation7], 4294965888  ;;  %v58_v0 = vld [vmem:[#allocation3 + $0x8] sm:$0xff]  ;;  %v56_v1 = vld [vmem:[#allocation3] sm:$0xff]  ;;  %s1960_s23 = smov 16   ;;  %s1961_s2 = smov 1   ;;  %v74_v5 = vlaneseq }
  0x38   :  { %115 = vrot.lane.b32.xlu1 %v58_v0, %s1960_s23  ;;  %269 = vst [vmem:[#allocation2 + $0x50] sm:$0xf] %v58_v0  ;;  %111 = vrot.lane.b32.xlu0 %v56_v1, %s1960_s23  ;;  %267 = vst [vmem:[#allocation2 + $0x40] sm:$0xf] %v56_v1  ;;  %v63_v2 = vcombine.high %v58_v0, %v58_v0  ;;  %v60_v3 = vcombine.high %v56_v1, %v56_v1  ;;  %s1962_s26 = smov 17   ;;  %s1963_s27 = smov 15  }
  0x39   :  { %s1964_s28 = smov 127   ;;  %s1965_s29 = smov 112   ;;  %v1968_v4 = vmov 0.0   ;;  %v84_v6 = vshrl.u32 %v74_v5, 7  ;;  %v2073_v7 = vand.u32 127, %v74_v5  ;;  %vm495_vm8 = vcmask 1043456  }
  0x3a   :  { %270 = vst [vmem:[#allocation2 + $0x58] sm:$0xf] %v63_v2  ;;  %268 = vst [vmem:[#allocation2 + $0x48] sm:$0xf] %v60_v3  ;;  %s1966_s30 = smov 113   ;;  %s1967_s4 = smov 111   ;;  %572 = vmatprep.mubr.f32.mxu0 %v1968_v4  ;;  %643 = vmatprep.mubr.f32.mxu1 %v1968_v4 }
  0x3b   :  { %v2075_v8 = vsub.s32 0, %v84_v6  ;;  %v2077_v9 = vsub.s32 3, %v84_v6  ;;  %v125_v10 = vld [vmem:[#allocation8 + $0x1] ss:$8 sm:$0xf]  ;;  %v2079_v13 = vsub.s32 1, %v84_v6 }
  0x3c   :  { %117 = vrot.lane.b32.xlu1 %v63_v2, %s1960_s23  ;;  %211 = vrot.lane.b32.xlu0 %v56_v1, %s1961_s2  ;;  %v2081_v14 = vsub.s32 2, %v84_v6  ;;  %vm119_vm0 = vcmp.lt.s32.totalorder %v2073_v7, 16  ;;  %v225_v17 = vld [vmem:[#allocation8 + $0x3] ss:$8 sm:$0xf]  ;;  %vm219_vm1 = vcmp.lt.s32.totalorder %v2073_v7, 1 }
  0x3d   :  { %v130_v15 = vrot.slane %v125_v10, %v2075_v8  ;;  %v142_v16 = vrot.slane %v125_v10, %v2077_v9  ;;  %v234_v22 = vrot.slane %v225_v17, %v2079_v13  ;;  %v134_v25 = vrot.slane %v125_v10, %v2079_v13  ;;  %v81_v40 = vld [vmem:[#allocation8] ss:$8 sm:$0xf]  ;;  %v181_v63 = vld [vmem:[#allocation8 + $0x2] ss:$8 sm:$0xf] }
  0x3e   :  { %v138_v26 = vrot.slane %v125_v10, %v2081_v14  ;;  %v230_v31 = vrot.slane %v225_v17, %v2075_v8  ;;  %v238_v35 = vrot.slane %v225_v17, %v2081_v14  ;;  %v242_v39 = vrot.slane %v225_v17, %v2077_v9  ;;  %s1969_s5 = smov [#allocation9]  }
  0x3f   :  { %vm76_vm2 = vcmp.lt.s32.totalorder %v2073_v7, 17  ;;  %v90_v52 = vrot.slane %v81_v40, %v2079_v13  ;;  %v86_v60 = vrot.slane %v81_v40, %v2075_v8  ;;  %v94_v61 = vrot.slane %v81_v40, %v2081_v14  ;;  %s1737_s6 = sshll.u32 %s1969_s5, 4  ;;  %s1738_s6 = int_to_ptr.vmem [resolvable:$true] %s1737_s6 }
  0x40   :  { %213 = vrot.lane.b32.xlu1 %v60_v3, %s1961_s2  ;;  %113 = vrot.lane.b32.xlu0 %v60_v3, %s1960_s23  ;;  %v98_v62 = vrot.slane %v81_v40, %v2077_v9  ;;  %vm175_vm3 = vcmp.lt.s32.totalorder %v2073_v7, 15  ;;  %vm279_vm4 = vcmp.lt.s32.totalorder %v2073_v7, 127  ;;  %vm379_vm5 = vcmp.lt.s32.totalorder %v2073_v7, 112  ;;  %s1925_s7 = scalar_lea.vmem %s1738_s6, 256  ;;  %p1930_p11 = scmp.lt.s32.totalorder %s1738_s6, %s1738_s6 }
  0x41   :  { %vm335_vm6 = vcmp.lt.s32.totalorder %v2073_v7, 113  ;;  %vm435_vm7 = vcmp.lt.s32.totalorder %v2073_v7, 111  ;;  %vm491_vm9 = vcmask 293888   ;;  %vm1040_vm14 = vcmask 588800   ;;  %p1926_p10 = scmp.ne.s32.totalorder %s1738_s6, %s1925_s7  ;;  %p1931_p12 = scmp.lt.s32.totalorder %s1925_s7, %s1925_s7 }
  0x43   :  { %p1932_p13 = por %p1931_p12, %p1930_p11 }
  0x44   :  { %217 = vrot.lane.b32.xlu1 %v63_v2, %s1961_s2  ;;  %215 = vrot.lane.b32.xlu0 %v58_v0, %s1961_s2 }
  0x45   :  { %p1933_p0 = pnand %p1932_p13, %p1926_p10 }
  0x48   :  { %68 = vrot.lane.b32.xlu1 %v60_v3, %s1962_s26  ;;  %66 = vrot.lane.b32.xlu0 %v56_v1, %s1962_s26 }
  0x4c   :  { %72 = vrot.lane.b32.xlu1 %v63_v2, %s1962_s26  ;;  %70 = vrot.lane.b32.xlu0 %v58_v0, %s1962_s26 }
  0x50   :  { %169 = vrot.lane.b32.xlu1 %v60_v3, %s1963_s27  ;;  %167 = vrot.lane.b32.xlu0 %v56_v1, %s1963_s27 }
  0x54   :  { %173 = vrot.lane.b32.xlu1 %v63_v2, %s1963_s27  ;;  %171 = vrot.lane.b32.xlu0 %v58_v0, %s1963_s27 }
  0x58   :  { %273 = vrot.lane.b32.xlu1 %v60_v3, %s1964_s28  ;;  %271 = vrot.lane.b32.xlu0 %v56_v1, %s1964_s28 }
  0x5c   :  { %277 = vrot.lane.b32.xlu1 %v63_v2, %s1964_s28  ;;  %275 = vrot.lane.b32.xlu0 %v58_v0, %s1964_s28 }
  0x60   :  { %373 = vrot.lane.b32.xlu1 %v60_v3, %s1965_s29  ;;  %371 = vrot.lane.b32.xlu0 %v56_v1, %s1965_s29 }
  0x64   :  { %377 = vrot.lane.b32.xlu1 %v63_v2, %s1965_s29  ;;  %375 = vrot.lane.b32.xlu0 %v58_v0, %s1965_s29 }
  0x68   :  { %329 = vrot.lane.b32.xlu1 %v60_v3, %s1966_s30  ;;  %327 = vrot.lane.b32.xlu0 %v56_v1, %s1966_s30 }
  0x6c   :  { %333 = vrot.lane.b32.xlu1 %v63_v2, %s1966_s30  ;;  %331 = vrot.lane.b32.xlu0 %v58_v0, %s1966_s30 }
  0x70   :  { %429 = vrot.lane.b32.xlu1 %v60_v3, %s1967_s4  ;;  %427 = vrot.lane.b32.xlu0 %v56_v1, %s1967_s4 }
  0x74   :  { %433 = vrot.lane.b32.xlu1 %v63_v2, %s1967_s4  ;;  %431 = vrot.lane.b32.xlu0 %v58_v0, %s1967_s4 }
  0xaa   :  { %v116_v11 = vpop.permute.xlu1 %115  ;;  %v112_v12 = vpop.permute.xlu0 %111 }
  0xae   :  { %v118_v18 = vpop.permute.xlu1 %117  ;;  %v212_v19 = vpop.permute.xlu0 %211 }
  0xaf   :  { %v120_v20 = vsel %vm119_vm0, %v116_v11, %v118_v18  ;;  %v123_v21 = vsel %vm119_vm0, %v118_v18, %v112_v12 }
  0xb0   :  { %v147_v23 = vmul.f32 %v130_v15, %v123_v21  ;;  %v150_v24 = vmul.f32 %v142_v16, %v120_v20  ;;  %v194_v20 = vrot.slane %v181_v63, %v2081_v14  ;;  %v198_v21 = vrot.slane %v181_v63, %v2077_v9 }
  0xb2   :  { %v155_v27 = vrot.slane %v147_v23, 4  ;;  %v158_v28 = vrot.slane %v150_v24, 4  ;;  %v214_v29 = vpop.permute.xlu1 %213  ;;  %v114_v30 = vpop.permute.xlu0 %113 }
  0xb3   :  { %v222_v32 = vsel %vm219_vm1, %v212_v19, %v214_v29  ;;  %v121_v33 = vsel %vm119_vm0, %v114_v30, %v116_v11  ;;  %v122_v34 = vsel %vm119_vm0, %v112_v12, %v114_v30  ;;  %v190_v12 = vrot.slane %v181_v63, %v2079_v13 }
  0xb4   :  { %163 = vst [vmem:[#allocation2] sm:$0xf0] %v155_v27  ;;  %166 = vst [vmem:[#allocation2 + $0x18] sm:$0xf0] %v158_v28  ;;  %v248_v36 = vmul.f32 %v234_v22, %v222_v32  ;;  %v148_v37 = vmul.f32 %v134_v25, %v122_v34  ;;  %v149_v38 = vmul.f32 %v138_v26, %v121_v33 }
  0xb5   :  { %v285_v22 = vld [vmem:[#allocation8 + $0x5] ss:$8 sm:$0xf] }
  0xb6   :  { %v256_v41 = vrot.slane %v248_v36, 4  ;;  %v156_v42 = vrot.slane %v148_v37, 4  ;;  %v157_v43 = vrot.slane %v149_v38, 4  ;;  %v218_v44 = vpop.permute.xlu1 %217  ;;  %v216_v45 = vpop.permute.xlu0 %215  ;;  %v302_v36 = vrot.slane %v285_v22, %v2077_v9 }
  0xb7   :  { %v223_v46 = vsel %vm219_vm1, %v218_v44, %v212_v19  ;;  %v220_v47 = vsel %vm219_vm1, %v216_v45, %v218_v44  ;;  %v221_v48 = vsel %vm219_vm1, %v214_v29, %v216_v45  ;;  %v186_v19 = vrot.slane %v181_v63, %v2075_v8 }
  0xb8   :  { %264 = vst [vmem:[#allocation2 + $0x28] sm:$0xf0] %v256_v41  ;;  %164 = vst [vmem:[#allocation2 + $0x8] sm:$0xf0] %v156_v42  ;;  %v247_v49 = vmul.f32 %v230_v31, %v223_v46  ;;  %v249_v50 = vmul.f32 %v238_v35, %v221_v48  ;;  %v250_v51 = vmul.f32 %v242_v39, %v220_v47 }
  0xb9   :  { %165 = vst [vmem:[#allocation2 + $0x10] sm:$0xf0] %v157_v43  ;;  %v290_v31 = vrot.slane %v285_v22, %v2075_v8  ;;  %v294_v37 = vrot.slane %v285_v22, %v2079_v13  ;;  %v298_v38 = vrot.slane %v285_v22, %v2081_v14  ;;  %v385_v41 = vld [vmem:[#allocation8 + $0x7] ss:$8 sm:$0xf] }
  0xba   :  { %v255_v53 = vrot.slane %v247_v49, 4  ;;  %v257_v54 = vrot.slane %v249_v50, 4  ;;  %v258_v55 = vrot.slane %v250_v51, 4  ;;  %v69_v56 = vpop.permute.xlu1 %68  ;;  %v67_v57 = vpop.permute.xlu0 %66 }
  0xbb   :  { %v79_v58 = vsel %vm76_vm2, %v67_v57, %v69_v56 }
  0xbc   :  { %263 = vst [vmem:[#allocation2 + $0x20] sm:$0xf0] %v255_v53  ;;  %265 = vst [vmem:[#allocation2 + $0x30] sm:$0xf0] %v257_v54  ;;  %v104_v59 = vmul.f32 %v90_v52, %v79_v58  ;;  %v390_v52 = vrot.slane %v385_v41, %v2075_v8 }
  0xbd   :  { %266 = vst [vmem:[#allocation2 + $0x38] sm:$0xf0] %v258_v55 }
  0xbe   :  { %108 = vst [vmem:[#allocation2 + $0x8] sm:$0xf] %v104_v59  ;;  %v73_v0 = vpop.permute.xlu1 %72  ;;  %v71_v1 = vpop.permute.xlu0 %70 }
  0xbf   :  { %v80_v2 = vsel %vm76_vm2, %v73_v0, %v67_v57  ;;  %v77_v3 = vsel %vm76_vm2, %v71_v1, %v73_v0  ;;  %v78_v5 = vsel %vm76_vm2, %v69_v56, %v71_v1 }
  0xc0   :  { %v103_v6 = vmul.f32 %v86_v60, %v80_v2  ;;  %v105_v10 = vmul.f32 %v94_v61, %v78_v5  ;;  %v106_v11 = vmul.f32 %v98_v62, %v77_v3 }
  0xc2   :  { %107 = vst [vmem:[#allocation2] sm:$0xf] %v103_v6  ;;  %109 = vst [vmem:[#allocation2 + $0x10] sm:$0xf] %v105_v10  ;;  %v170_v15 = vpop.permute.xlu1 %169  ;;  %v168_v16 = vpop.permute.xlu0 %167  ;;  %v402_v6 = vrot.slane %v385_v41, %v2077_v9  ;;  %v394_v10 = vrot.slane %v385_v41, %v2079_v13 }
  0xc3   :  { %110 = vst [vmem:[#allocation2 + $0x18] sm:$0xf] %v106_v11  ;;  %v178_v17 = vsel %vm175_vm3, %v168_v16, %v170_v15  ;;  %v398_v11 = vrot.slane %v385_v41, %v2081_v14 }
  0xc4   :  { %v204_v18 = vmul.f32 %v190_v12, %v178_v17  ;;  %v341_v12 = vld [vmem:[#allocation8 + $0x6] ss:$8 sm:$0xf] }
  0xc5   :  { %v472_v39 = vld [vmem:[#allocation2 + $0x8] sm:$0xff] }
  0xc6   :  { %208 = vst [vmem:[#allocation2 + $0x28] sm:$0xf] %v204_v18  ;;  %v174_v23 = vpop.permute.xlu1 %173  ;;  %v172_v24 = vpop.permute.xlu0 %171 }
  0xc7   :  { %v179_v25 = vsel %vm175_vm3, %v174_v23, %v168_v16  ;;  %v176_v26 = vsel %vm175_vm3, %v172_v24, %v174_v23  ;;  %v177_v27 = vsel %vm175_vm3, %v170_v15, %v172_v24  ;;  %v346_v24 = vrot.slane %v341_v12, %v2075_v8 }
  0xc8   :  { %v203_v28 = vmul.f32 %v186_v19, %v179_v25  ;;  %v205_v29 = vmul.f32 %v194_v20, %v177_v27  ;;  %v206_v30 = vmul.f32 %v198_v21, %v176_v26 }
  0xc9   :  { %v471_v53 = vld [vmem:[#allocation2] sm:$0xff]  ;;  %v473_v0 = vld [vmem:[#allocation2 + $0x10] sm:$0xff] }
  0xca   :  { %207 = vst [vmem:[#allocation2 + $0x20] sm:$0xf] %v203_v28  ;;  %209 = vst [vmem:[#allocation2 + $0x30] sm:$0xf] %v205_v29  ;;  %v274_v32 = vpop.permute.xlu1 %273  ;;  %v272_v33 = vpop.permute.xlu0 %271  ;;  %v474_v63 = vld [vmem:[#allocation2 + $0x18] sm:$0xff] }
  0xcb   :  { %210 = vst [vmem:[#allocation2 + $0x38] sm:$0xf] %v206_v30  ;;  %v282_v34 = vsel %vm279_vm4, %v272_v33, %v274_v32 }
  0xcc   :  { %v307_v35 = vmul.f32 %v290_v31, %v282_v34  ;;  %v354_v34 = vrot.slane %v341_v12, %v2081_v14 }
  0xcd   :  { %v476_v40 = vld [vmem:[#allocation2 + $0x28] sm:$0xff] }
  0xce   :  { %v315_v42 = vrot.slane %v307_v35, 4  ;;  %v278_v43 = vpop.permute.xlu1 %277  ;;  %v276_v44 = vpop.permute.xlu0 %275  ;;  %v1760_v45 = vpack.c.bf16 %v476_v40, %v472_v39  ;;  %v441_v35 = vld [vmem:[#allocation8 + $0x20] ss:$8 sm:$0xf] }
  0xcf   :  { %v283_v46 = vsel %vm279_vm4, %v278_v43, %v272_v33  ;;  %v280_v47 = vsel %vm279_vm4, %v276_v44, %v278_v43  ;;  %v281_v48 = vsel %vm279_vm4, %v274_v32, %v276_v44  ;;  %v358_v32 = vrot.slane %v341_v12, %v2077_v9 }
  0xd0   :  { %323 = vst [vmem:[#allocation2 + $0x40] sm:$0xf0] %v315_v42  ;;  %v310_v49 = vmul.f32 %v302_v36, %v283_v46  ;;  %v308_v50 = vmul.f32 %v294_v37, %v281_v48  ;;  %v309_v51 = vmul.f32 %v298_v38, %v280_v47  ;;  %1761 = vmatprep.subr.bf16.mxu0 %v1760_v45 }
  0xd1   :  { %v475_v54 = vld [vmem:[#allocation2 + $0x20] sm:$0xff]  ;;  %v477_v56 = vld [vmem:[#allocation2 + $0x30] sm:$0xff]  ;;  %v350_v33 = vrot.slane %v341_v12, %v2079_v13  ;;  %v446_v44 = vrot.slane %v441_v35, %v2075_v8 }
  0xd2   :  { %v478_v55 = vld [vmem:[#allocation2 + $0x38] sm:$0xff]  ;;  %v318_v57 = vrot.slane %v310_v49, 4  ;;  %v316_v58 = vrot.slane %v308_v50, 4  ;;  %v317_v59 = vrot.slane %v309_v51, 4  ;;  %v374_v60 = vpop.permute.xlu1 %373  ;;  %v372_v61 = vpop.permute.xlu0 %371  ;;  %v1762_v62 = vpack.c.bf16 %v475_v54, %v471_v53  ;;  %v65_v12 = vld [vmem:[#allocation6] sm:$0xff] }
  0xd3   :  { %v382_v1 = vsel %vm379_vm5, %v372_v61, %v374_v60  ;;  %v1768_v2 = vpack.c.bf16 %v478_v55, %v474_v63  ;;  %v1770_v3 = vpack.c.bf16 %v477_v56, %v473_v0  ;;  %v458_v49 = vrot.slane %v441_v35, %v2077_v9 }
  0xd4   :  { %326 = vst [vmem:[#allocation2 + $0x58] sm:$0xf0] %v318_v57  ;;  %324 = vst [vmem:[#allocation2 + $0x48] sm:$0xf0] %v316_v58  ;;  %v407_v5 = vmul.f32 %v390_v52, %v382_v1  ;;  %1763 = vmatpush1.bf16.msra.mxu0 %v1762_v62  ;;  %v450_v50 = vrot.slane %v441_v35, %v2079_v13  ;;  %v454_v51 = vrot.slane %v441_v35, %v2081_v14 }
  0xd5   :  { %325 = vst [vmem:[#allocation2 + $0x50] sm:$0xf0] %v317_v59  ;;  %1769 = vmatprep.subr.bf16.mxu1 %v1768_v2  ;;  %v718_v35 = vld [vmem:[#allocation8 + $0x1] ss:$8 sm:$0xf] }
  0xd6   :  { %v415_v15 = vrot.slane %v407_v5, 4  ;;  %1771 = vmatpush1.bf16.msra.mxu1 %v1770_v3  ;;  %v378_v16 = vpop.permute.xlu1 %377  ;;  %v376_v17 = vpop.permute.xlu0 %375 }
  0xd7   :  { %v383_v18 = vsel %vm379_vm5, %v378_v16, %v372_v61  ;;  %v380_v19 = vsel %vm379_vm5, %v376_v17, %v378_v16  ;;  %v381_v20 = vsel %vm379_vm5, %v374_v60, %v376_v17 }
  0xd8   :  { %423 = vst [vmem:[#allocation2 + $0x60] sm:$0xf0] %v415_v15  ;;  %v410_v21 = vmul.f32 %v402_v6, %v383_v18  ;;  %v408_v22 = vmul.f32 %v394_v10, %v381_v20  ;;  %v409_v23 = vmul.f32 %v398_v11, %v380_v19  ;;  %v479_v6 = vld [vmem:[#allocation2 + $0x40] sm:$0xff] }
  0xda   :  { %v418_v25 = vrot.slane %v410_v21, 4  ;;  %v416_v26 = vrot.slane %v408_v22, 4  ;;  %v417_v27 = vrot.slane %v409_v23, 4  ;;  %v330_v28 = vpop.permute.xlu1 %329  ;;  %v328_v29 = vpop.permute.xlu0 %327 }
  0xdb   :  { %v338_v30 = vsel %vm335_vm6, %v328_v29, %v330_v28  ;;  %v480_v57 = vld [vmem:[#allocation2 + $0x48] sm:$0xff]  ;;  %v482_v61 = vld [vmem:[#allocation2 + $0x58] sm:$0xff] }
  0xdc   :  { %426 = vst [vmem:[#allocation2 + $0x78] sm:$0xf0] %v418_v25  ;;  %424 = vst [vmem:[#allocation2 + $0x68] sm:$0xf0] %v416_v26  ;;  %v363_v31 = vmul.f32 %v346_v24, %v338_v30  ;;  %v481_v63 = vld [vmem:[#allocation2 + $0x50] sm:$0xff] }
  0xdd   :  { %425 = vst [vmem:[#allocation2 + $0x70] sm:$0xf0] %v417_v27 }
  0xde   :  { %367 = vst [vmem:[#allocation2 + $0x60] sm:$0xf] %v363_v31  ;;  %v334_v36 = vpop.permute.xlu1 %333  ;;  %v332_v37 = vpop.permute.xlu0 %331 }
  0xdf   :  { %v339_v38 = vsel %vm335_vm6, %v334_v36, %v328_v29  ;;  %v336_v39 = vsel %vm335_vm6, %v332_v37, %v334_v36  ;;  %v337_v40 = vsel %vm335_vm6, %v330_v28, %v332_v37 }
  0xe0   :  { %v366_v41 = vmul.f32 %v358_v32, %v339_v38  ;;  %v364_v42 = vmul.f32 %v350_v33, %v337_v40  ;;  %v365_v43 = vmul.f32 %v354_v34, %v336_v39  ;;  %v676_v33 = vld [vmem:[#allocation8] ss:$8 sm:$0xf]  ;;  %v727_v38 = vrot.slane %v718_v35, %v2079_v13 }
  0xe1   :  { %v685_v37 = vrot.slane %v676_v33, %v2079_v13 }
  0xe2   :  { %370 = vst [vmem:[#allocation2 + $0x78] sm:$0xf] %v366_v41  ;;  %368 = vst [vmem:[#allocation2 + $0x68] sm:$0xf] %v364_v42  ;;  %v430_v45 = vpop.permute.xlu1 %429  ;;  %v428_v46 = vpop.permute.xlu0 %427  ;;  %v681_v42 = vrot.slane %v676_v33, %v2075_v8 }
  0xe3   :  { %369 = vst [vmem:[#allocation2 + $0x70] sm:$0xf] %v365_v43  ;;  %v438_v47 = vsel %vm435_vm7, %v428_v46, %v430_v45  ;;  %v693_v43 = vrot.slane %v676_v33, %v2077_v9 }
  0xe4   :  { %v463_v48 = vmul.f32 %v446_v44, %v438_v47 }
  0xe5   :  { %v483_v62 = vld [vmem:[#allocation2 + $0x60] sm:$0xff] }
  0xe6   :  { %467 = vst [vmem:[#allocation2 + $0x80] sm:$0xf] %v463_v48  ;;  %v434_v52 = vpop.permute.xlu1 %433  ;;  %v432_v53 = vpop.permute.xlu0 %431  ;;  %v1766_v11 = vpack.c.bf16 %v483_v62, %v479_v6  ;;  %v723_v48 = vrot.slane %v718_v35, %v2075_v8 }
  0xe7   :  { %v439_v54 = vsel %vm435_vm7, %v434_v52, %v428_v46  ;;  %v436_v55 = vsel %vm435_vm7, %v432_v53, %v434_v52  ;;  %v437_v56 = vsel %vm435_vm7, %v430_v45, %v432_v53  ;;  %v731_v45 = vrot.slane %v718_v35, %v2081_v14 }
  0xe8   :  { %v466_v58 = vmul.f32 %v458_v49, %v439_v54  ;;  %v464_v59 = vmul.f32 %v450_v50, %v437_v56  ;;  %v465_v60 = vmul.f32 %v454_v51, %v436_v55  ;;  %v735_v49 = vrot.slane %v718_v35, %v2077_v9 }
  0xe9   :  { %v484_v0 = vld [vmem:[#allocation2 + $0x68] sm:$0xff]  ;;  %v486_v1 = vld [vmem:[#allocation2 + $0x78] sm:$0xff]  ;;  %v689_v50 = vrot.slane %v676_v33, %v2081_v14 }
  0xea   :  { %v485_v2 = vld [vmem:[#allocation2 + $0x70] sm:$0xff]  ;;  %470 = vst [vmem:[#allocation2 + $0x98] sm:$0xf] %v466_v58  ;;  %468 = vst [vmem:[#allocation2 + $0x88] sm:$0xf] %v464_v59  ;;  %v1764_v3 = vpack.c.bf16 %v484_v0, %v480_v57  ;;  %v1772_v5 = vpack.c.bf16 %v486_v1, %v482_v61 }
  0xeb   :  { %469 = vst [vmem:[#allocation2 + $0x90] sm:$0xf] %v465_v60  ;;  %v1774_v10 = vpack.c.bf16 %v485_v2, %v481_v63 }
  0xec   :  { %1765 = vmatprep.subr.bf16.mxu0 %v1764_v3  ;;  %1773 = vmatprep.subr.bf16.mxu1 %v1772_v5 }
  0xed   :  { %1767 = vmatpush1.bf16.msra.mxu0 %v1766_v11  ;;  %1775 = vmatpush1.bf16.msra.mxu1 %v1774_v10  ;;  %v487_v18 = vld [vmem:[#allocation2 + $0x80] sm:$0xf] }
  0xee   :  { %v760_v11 = vld [vmem:[#allocation8 + $0x2] ss:$8 sm:$0xf] }
  0xf1   :  { %v488_v15 = vld [vmem:[#allocation2 + $0x88] sm:$0xf]  ;;  %v490_v16 = vld [vmem:[#allocation2 + $0x98] sm:$0xf] }
  0xf2   :  { %v489_v17 = vld [vmem:[#allocation2 + $0x90] sm:$0xf]  ;;  %1750 = vmatprep.subr.msk.mxu0 %vm495_vm8, %v488_v15  ;;  %1753 = vmatprep.subr.msk.mxu1 %vm495_vm8, %v490_v16 }
  0xf3   :  { %1751 = vmatpush1.msk.msra.mxu0 %vm495_vm8, %v487_v18  ;;  %1754 = vmatpush1.msk.msra.mxu1 %vm495_vm8, %v489_v17  ;;  %v802_v15 = vld [vmem:[#allocation8 + $0x3] ss:$8 sm:$0xf]  ;;  %v769_v17 = vrot.slane %v760_v11, %v2079_v13 }
  0xf4   :  { %1752 = vmatmul.mubr.msk.f32.vlgmr.msra.gmra.mrb[0].mxu0 %vm491_vm9, %v65_v12  ;;  %1755 = vmatmul.mubr.msk.f32.vlgmr.msra.gmra.mrb[0].mxu1 %vm491_vm9, %v65_v12  ;;  %v811_v18 = vrot.slane %v802_v15, %v2079_v13  ;;  %v819_v33 = vrot.slane %v802_v15, %v2077_v9 }
  0xf5   :  { %1108 = vmatprep.mubr.f32.mxu0 %v1968_v4  ;;  %1179 = vmatprep.mubr.f32.mxu1 %v1968_v4 }
 0x1c7   :  { %v574_v19 = vpop.f32.mrb[0].mxu0  ;;  %v645_v20 = vpop.f32.mrb[0].mxu1 }
 0x1c8   :  { %vm650_vm10 = vcmp.gt.f32.partialorder %v574_v19, 0.0  ;;  %v654_v21 = vmul.f32 0.01, %v574_v19  ;;  %v576_v22 = vpop.f32.mrb[1].mxu0  ;;  %v647_v23 = vpop.f32.mrb[1].mxu1  ;;  %vm652_vm12 = vcmp.gt.f32.partialorder %v645_v20, 0.0 }
 0x1c9   :  { %vm651_vm11 = vcmp.gt.f32.partialorder %v576_v22, 0.0  ;;  %v655_v24 = vmul.f32 0.01, %v576_v22  ;;  %v656_v26 = vmul.f32 0.01, %v645_v20  ;;  %vm653_vm13 = vcmp.gt.f32.partialorder %v647_v23, 0.0 }
 0x1ca   :  { %v2189_v25 = vsel %vm650_vm10, %v574_v19, %v654_v21  ;;  %v657_v28 = vmul.f32 0.01, %v647_v23 }
 0x1cb   :  { %v2191_v27 = vsel %vm651_vm11, %v576_v22, %v655_v24  ;;  %664 = vrot.lane.b32.xlu0 %v2189_v25, %s1962_s26  ;;  %v2197_v29 = vsel %vm652_vm12, %v645_v20, %v656_v26  ;;  %v765_v22 = vrot.slane %v760_v11, %v2075_v8  ;;  %v815_v26 = vrot.slane %v802_v15, %v2081_v14 }
 0x1cc   :  { %666 = vrot.lane.b32.xlu1 %v2191_v27, %s1962_s26  ;;  %v2199_v30 = vsel %vm653_vm13, %v647_v23, %v657_v28  ;;  %v777_v23 = vrot.slane %v760_v11, %v2077_v9 }
 0x1cf   :  { %668 = vrot.lane.b32.xlu0 %v2197_v29, %s1962_s26 }
 0x1d0   :  { %670 = vrot.lane.b32.xlu1 %v2199_v30, %s1962_s26 }
 0x1d3   :  { %706 = vrot.lane.b32.xlu0 %v2189_v25, %s1960_s23 }
 0x1d4   :  { %708 = vrot.lane.b32.xlu1 %v2191_v27, %s1960_s23 }
 0x1d7   :  { %710 = vrot.lane.b32.xlu0 %v2197_v29, %s1960_s23 }
 0x1d8   :  { %712 = vrot.lane.b32.xlu1 %v2199_v30, %s1960_s23 }
 0x1db   :  { %748 = vrot.lane.b32.xlu0 %v2189_v25, %s1963_s27 }
 0x1dc   :  { %750 = vrot.lane.b32.xlu1 %v2191_v27, %s1963_s27 }
 0x1df   :  { %752 = vrot.lane.b32.xlu0 %v2197_v29, %s1963_s27 }
 0x1e0   :  { %754 = vrot.lane.b32.xlu1 %v2199_v30, %s1963_s27 }
 0x1e3   :  { %790 = vrot.lane.b32.xlu0 %v2189_v25, %s1961_s2 }
 0x1e4   :  { %792 = vrot.lane.b32.xlu1 %v2191_v27, %s1961_s2 }
 0x1e7   :  { %794 = vrot.lane.b32.xlu0 %v2197_v29, %s1961_s2 }
 0x1e8   :  { %796 = vrot.lane.b32.xlu1 %v2199_v30, %s1961_s2 }
 0x1eb   :  { %836 = vrot.lane.b32.xlu0 %v2189_v25, %s1964_s28 }
 0x1ec   :  { %838 = vrot.lane.b32.xlu1 %v2191_v27, %s1964_s28 }
 0x1ef   :  { %840 = vrot.lane.b32.xlu0 %v2197_v29, %s1964_s28 }
 0x1f0   :  { %842 = vrot.lane.b32.xlu1 %v2199_v30, %s1964_s28 }
 0x1f3   :  { %878 = vrot.lane.b32.xlu0 %v2189_v25, %s1966_s30 }
 0x1f4   :  { %880 = vrot.lane.b32.xlu1 %v2191_v27, %s1966_s30 }
 0x1f7   :  { %882 = vrot.lane.b32.xlu0 %v2197_v29, %s1966_s30 }
 0x1f8   :  { %884 = vrot.lane.b32.xlu1 %v2199_v30, %s1966_s30 }
 0x1fb   :  { %920 = vrot.lane.b32.xlu0 %v2189_v25, %s1965_s29 }
 0x1fc   :  { %922 = vrot.lane.b32.xlu1 %v2191_v27, %s1965_s29 }
 0x1ff   :  { %924 = vrot.lane.b32.xlu0 %v2197_v29, %s1965_s29 }
 0x200   :  { %926 = vrot.lane.b32.xlu1 %v2199_v30, %s1965_s29 }
 0x203   :  { %962 = vrot.lane.b32.xlu0 %v2189_v25, %s1967_s4 }
 0x204   :  { %964 = vrot.lane.b32.xlu1 %v2191_v27, %s1967_s4 }
 0x207   :  { %966 = vrot.lane.b32.xlu0 %v2197_v29, %s1967_s4 }
 0x208   :  { %968 = vrot.lane.b32.xlu1 %v2199_v30, %s1967_s4 }
 0x23d   :  { %v665_v31 = vpop.permute.xlu0 %664 }
 0x23e   :  { %v667_v32 = vpop.permute.xlu1 %666 }
 0x23f   :  { %v674_v39 = vsel %vm76_vm2, %v665_v31, %v667_v32 }
 0x240   :  { %v699_v46 = vmul.f32 %v685_v37, %v674_v39 }
 0x241   :  { %v669_v34 = vpop.permute.xlu0 %668 }
 0x242   :  { %v671_v36 = vpop.permute.xlu1 %670  ;;  %v673_v54 = vsel %vm76_vm2, %v667_v32, %v669_v34  ;;  %v807_v32 = vrot.slane %v802_v15, %v2075_v8 }
 0x243   :  { %v672_v51 = vsel %vm76_vm2, %v669_v34, %v671_v36  ;;  %v675_v52 = vsel %vm76_vm2, %v671_v36, %v665_v31  ;;  %v700_v1 = vmul.f32 %v689_v50, %v673_v54  ;;  %v773_v34 = vrot.slane %v760_v11, %v2081_v14 }
 0x244   :  { %v698_v61 = vmul.f32 %v681_v42, %v675_v52  ;;  %v701_v62 = vmul.f32 %v693_v43, %v672_v51 }
 0x245   :  { %v707_v40 = vpop.permute.xlu0 %706 }
 0x246   :  { %v709_v41 = vpop.permute.xlu1 %708 }
 0x247   :  { %v716_v44 = vsel %vm119_vm0, %v707_v40, %v709_v41 }
 0x248   :  { %v741_v47 = vmul.f32 %v727_v38, %v716_v44 }
 0x249   :  { %v711_v53 = vpop.permute.xlu0 %710 }
 0x24a   :  { %v715_v55 = vsel %vm119_vm0, %v709_v41, %v711_v53  ;;  %v713_v56 = vpop.permute.xlu1 %712  ;;  %v1776_v57 = vpack.c.bf16 %v741_v47, %v699_v46 }
 0x24b   :  { %v742_v58 = vmul.f32 %v731_v45, %v715_v55  ;;  %v714_v59 = vsel %vm119_vm0, %v711_v53, %v713_v56  ;;  %v717_v60 = vsel %vm119_vm0, %v713_v56, %v707_v40  ;;  %v848_v45 = vld [vmem:[#allocation8 + $0x5] ss:$8 sm:$0xf] }
 0x24c   :  { %v740_v63 = vmul.f32 %v723_v48, %v717_v60  ;;  %v743_v0 = vmul.f32 %v735_v49, %v714_v59  ;;  %1777 = vmatprep.subr.bf16.mxu0 %v1776_v57  ;;  %v853_v52 = vrot.slane %v848_v45, %v2075_v8  ;;  %v857_v57 = vrot.slane %v848_v45, %v2079_v13 }
 0x24d   :  { %v749_v2 = vpop.permute.xlu0 %748  ;;  %v1794_v10 = vpack.c.bf16 %v742_v58, %v700_v1  ;;  %v861_v59 = vrot.slane %v848_v45, %v2081_v14  ;;  %v865_v60 = vrot.slane %v848_v45, %v2077_v9 }
 0x24e   :  { %v751_v3 = vpop.permute.xlu1 %750  ;;  %v1778_v5 = vpack.c.bf16 %v740_v63, %v698_v61  ;;  %v1792_v6 = vpack.c.bf16 %v743_v0, %v701_v62 }
 0x24f   :  { %v758_v19 = vsel %vm175_vm3, %v749_v2, %v751_v3 }
 0x250   :  { %1779 = vmatpush1.bf16.msra.mxu0 %v1778_v5  ;;  %1793 = vmatprep.subr.bf16.mxu1 %v1792_v6  ;;  %v783_v28 = vmul.f32 %v769_v17, %v758_v19 }
 0x251   :  { %v753_v12 = vpop.permute.xlu0 %752  ;;  %1795 = vmatpush1.bf16.msra.mxu1 %v1794_v10 }
 0x252   :  { %v755_v16 = vpop.permute.xlu1 %754  ;;  %v757_v38 = vsel %vm175_vm3, %v751_v3, %v753_v12 }
 0x253   :  { %v756_v35 = vsel %vm175_vm3, %v753_v12, %v755_v16  ;;  %v759_v36 = vsel %vm175_vm3, %v755_v16, %v749_v2  ;;  %v784_v50 = vmul.f32 %v773_v34, %v757_v38 }
 0x254   :  { %v782_v46 = vmul.f32 %v765_v22, %v759_v36  ;;  %v785_v47 = vmul.f32 %v777_v23, %v756_v35 }
 0x255   :  { %v791_v20 = vpop.permute.xlu0 %790 }
 0x256   :  { %v793_v21 = vpop.permute.xlu1 %792 }
 0x257   :  { %v800_v24 = vsel %vm219_vm1, %v791_v20, %v793_v21 }
 0x258   :  { %v825_v31 = vmul.f32 %v811_v18, %v800_v24 }
 0x259   :  { %v795_v37 = vpop.permute.xlu0 %794 }
 0x25a   :  { %v799_v39 = vsel %vm219_vm1, %v793_v21, %v795_v37  ;;  %v797_v40 = vpop.permute.xlu1 %796  ;;  %v1780_v41 = vpack.c.bf16 %v825_v31, %v783_v28  ;;  %v932_v21 = vld [vmem:[#allocation8 + $0x7] ss:$8 sm:$0xf] }
 0x25b   :  { %v826_v42 = vmul.f32 %v815_v26, %v799_v39  ;;  %v798_v43 = vsel %vm219_vm1, %v795_v37, %v797_v40  ;;  %v801_v44 = vsel %vm219_vm1, %v797_v40, %v791_v20  ;;  %v890_v20 = vld [vmem:[#allocation8 + $0x6] ss:$8 sm:$0xf]  ;;  %v937_v26 = vrot.slane %v932_v21, %v2075_v8 }
 0x25c   :  { %v824_v48 = vmul.f32 %v807_v32, %v801_v44  ;;  %v827_v49 = vmul.f32 %v819_v33, %v798_v43  ;;  %1781 = vmatprep.subr.bf16.mxu0 %v1780_v41  ;;  %v895_v23 = vrot.slane %v890_v20, %v2075_v8  ;;  %v899_v24 = vrot.slane %v890_v20, %v2079_v13 }
 0x25d   :  { %v837_v51 = vpop.permute.xlu0 %836  ;;  %v1798_v58 = vpack.c.bf16 %v826_v42, %v784_v50  ;;  %v903_v32 = vrot.slane %v890_v20, %v2081_v14  ;;  %v941_v34 = vrot.slane %v932_v21, %v2079_v13  ;;  %v907_v36 = vrot.slane %v890_v20, %v2077_v9 }
 0x25e   :  { %v839_v53 = vpop.permute.xlu1 %838  ;;  %v1782_v54 = vpack.c.bf16 %v824_v48, %v782_v46  ;;  %v1796_v55 = vpack.c.bf16 %v827_v49, %v785_v47  ;;  %v945_v37 = vrot.slane %v932_v21, %v2081_v14  ;;  %v949_v38 = vrot.slane %v932_v21, %v2077_v9 }
 0x25f   :  { %v846_v56 = vsel %vm279_vm4, %v837_v51, %v839_v53 }
 0x260   :  { %1783 = vmatpush1.bf16.msra.mxu0 %v1782_v54  ;;  %1797 = vmatprep.subr.bf16.mxu1 %v1796_v55  ;;  %v870_v62 = vmul.f32 %v853_v52, %v846_v56  ;;  %v974_v55 = vld [vmem:[#allocation8 + $0x20] ss:$8 sm:$0xf] }
 0x261   :  { %v841_v61 = vpop.permute.xlu0 %840  ;;  %1799 = vmatpush1.bf16.msra.mxu1 %v1798_v58 }
 0x262   :  { %v845_v63 = vsel %vm279_vm4, %v839_v53, %v841_v61  ;;  %v843_v0 = vpop.permute.xlu1 %842  ;;  %v1786_v15 = vpack.c.bf16 %v870_v62, %v2189_v25  ;;  %v979_v62 = vrot.slane %v974_v55, %v2075_v8 }
 0x263   :  { %v871_v1 = vmul.f32 %v857_v57, %v845_v63  ;;  %v844_v2 = vsel %vm279_vm4, %v841_v61, %v843_v0  ;;  %v847_v3 = vsel %vm279_vm4, %v843_v0, %v837_v51  ;;  %v983_v61 = vrot.slane %v974_v55, %v2079_v13 }
 0x264   :  { %v872_v5 = vmul.f32 %v861_v59, %v844_v2  ;;  %v873_v6 = vmul.f32 %v865_v60, %v847_v3  ;;  %v987_v63 = vrot.slane %v974_v55, %v2081_v14  ;;  %v991_v0 = vrot.slane %v974_v55, %v2077_v9 }
 0x265   :  { %v879_v10 = vpop.permute.xlu0 %878  ;;  %v1784_v11 = vpack.c.bf16 %v871_v1, %v2191_v27 }
 0x266   :  { %v881_v12 = vpop.permute.xlu1 %880  ;;  %v1800_v16 = vpack.c.bf16 %v873_v6, %v2199_v30  ;;  %v1802_v17 = vpack.c.bf16 %v872_v5, %v2197_v29 }
 0x267   :  { %1785 = vmatprep.subr.bf16.mxu0 %v1784_v11  ;;  %v888_v31 = vsel %vm335_vm6, %v879_v10, %v881_v12 }
 0x268   :  { %1787 = vmatpush1.bf16.msra.mxu0 %v1786_v15  ;;  %1801 = vmatprep.subr.bf16.mxu1 %v1800_v16  ;;  %v912_v42 = vmul.f32 %v895_v23, %v888_v31 }
 0x269   :  { %v883_v18 = vpop.permute.xlu0 %882  ;;  %1803 = vmatpush1.bf16.msra.mxu1 %v1802_v17  ;;  %v663_v17 = vld [vmem:[#allocation6 + $0x8] sm:$0xff] }
 0x26a   :  { %v885_v19 = vpop.permute.xlu1 %884  ;;  %v887_v35 = vsel %vm335_vm6, %v881_v12, %v883_v18 }
 0x26b   :  { %v886_v39 = vsel %vm335_vm6, %v883_v18, %v885_v19  ;;  %v889_v40 = vsel %vm335_vm6, %v885_v19, %v879_v10  ;;  %v913_v46 = vmul.f32 %v899_v24, %v887_v35 }
 0x26c   :  { %v914_v50 = vmul.f32 %v903_v32, %v886_v39  ;;  %v915_v51 = vmul.f32 %v907_v36, %v889_v40 }
 0x26d   :  { %v921_v22 = vpop.permute.xlu0 %920 }
 0x26e   :  { %v923_v28 = vpop.permute.xlu1 %922 }
 0x26f   :  { %v930_v33 = vsel %vm379_vm5, %v921_v22, %v923_v28 }
 0x270   :  { %v954_v43 = vmul.f32 %v937_v26, %v930_v33 }
 0x271   :  { %v925_v41 = vpop.permute.xlu0 %924 }
 0x272   :  { %v929_v44 = vsel %vm379_vm5, %v923_v28, %v925_v41  ;;  %v927_v45 = vpop.permute.xlu1 %926  ;;  %v1790_v58 = vpack.c.bf16 %v954_v43, %v912_v42  ;;  %v1254_v43 = vld [vmem:[#allocation8 + $0x1] ss:$8 sm:$0xf] }
 0x273   :  { %v955_v47 = vmul.f32 %v941_v34, %v929_v44  ;;  %v928_v48 = vsel %vm379_vm5, %v925_v41, %v927_v45  ;;  %v931_v49 = vsel %vm379_vm5, %v927_v45, %v921_v22  ;;  %v1267_v55 = vrot.slane %v1254_v43, %v2081_v14 }
 0x274   :  { %v956_v52 = vmul.f32 %v945_v37, %v928_v48  ;;  %v957_v53 = vmul.f32 %v949_v38, %v931_v49 }
 0x275   :  { %v963_v54 = vpop.permute.xlu0 %962  ;;  %v1788_v56 = vpack.c.bf16 %v955_v47, %v913_v46 }
 0x276   :  { %v965_v57 = vpop.permute.xlu1 %964  ;;  %v1804_v59 = vpack.c.bf16 %v957_v53, %v915_v51  ;;  %v1806_v60 = vpack.c.bf16 %v956_v52, %v914_v50  ;;  %v1263_v51 = vrot.slane %v1254_v43, %v2079_v13 }
 0x277   :  { %1789 = vmatprep.subr.bf16.mxu0 %v1788_v56  ;;  %v972_v1 = vsel %vm435_vm7, %v963_v54, %v965_v57 }
 0x278   :  { %1791 = vmatpush1.bf16.msra.mxu0 %v1790_v58  ;;  %1805 = vmatprep.subr.bf16.mxu1 %v1804_v59  ;;  %v996_v12 = vmul.f32 %v979_v62, %v972_v1  ;;  %v1271_v58 = vrot.slane %v1254_v43, %v2077_v9 }
 0x279   :  { %v967_v2 = vpop.permute.xlu0 %966  ;;  %1807 = vmatpush1.bf16.msra.mxu1 %v1806_v60  ;;  %v1296_v60 = vld [vmem:[#allocation8 + $0x2] ss:$8 sm:$0xf] }
 0x27a   :  { %v971_v3 = vsel %vm435_vm7, %v965_v57, %v967_v2  ;;  %v969_v5 = vpop.permute.xlu1 %968  ;;  %v1259_v57 = vrot.slane %v1254_v43, %v2075_v8  ;;  %v1384_v43 = vld [vmem:[#allocation8 + $0x5] ss:$8 sm:$0xf] }
 0x27b   :  { %v997_v6 = vmul.f32 %v983_v61, %v971_v3  ;;  %v970_v10 = vsel %vm435_vm7, %v967_v2, %v969_v5  ;;  %v973_v11 = vsel %vm435_vm7, %v969_v5, %v963_v54 }
 0x27c   :  { %v998_v15 = vmul.f32 %v987_v63, %v970_v10  ;;  %v999_v16 = vmul.f32 %v991_v0, %v973_v11 }
 0x27d   :  { %1060 = vmatprep.subr.mxu0 %v997_v6  ;;  %v1305_v6 = vrot.slane %v1296_v60, %v2079_v13 }
 0x27e   :  { %1061 = vmatpush1.msra.mxu0 %v996_v12  ;;  %1131 = vmatprep.subr.mxu1 %v999_v16 }
 0x27f   :  { %1756 = vmatmul.mubr.msk.f32.vlgmr.msra.gmra.mrb[2].mxu0 %vm1040_vm14, %v663_v17  ;;  %1132 = vmatpush1.msra.mxu1 %v998_v15 }
 0x280   :  { %1757 = vmatmul.mubr.msk.f32.vlgmr.msra.gmra.mrb[2].mxu1 %vm1040_vm14, %v663_v17  ;;  %1643 = vmatprep.mubr.f32.mxu0 %v1968_v4  ;;  %v1309_v17 = vrot.slane %v1296_v60, %v2081_v14 }
 0x281   :  { %1714 = vmatprep.mubr.f32.mxu1 %v1968_v4 }
 0x352   :  { %v1110_v18 = vpop.f32.mrb[2].mxu0 }
 0x353   :  { %v1111_v19 = vadd.f32 %v1110_v18, %v2189_v25  ;;  %v1112_v20 = vpop.f32.mrb[3].mxu0  ;;  %v1181_v21 = vpop.f32.mrb[2].mxu1 }
 0x354   :  { %v1113_v22 = vadd.f32 %v1112_v20, %v2191_v27  ;;  %v1182_v23 = vadd.f32 %v1181_v21, %v2197_v29  ;;  %v1183_v24 = vpop.f32.mrb[3].mxu1  ;;  %v1301_v20 = vrot.slane %v1296_v60, %v2075_v8  ;;  %v1313_v21 = vrot.slane %v1296_v60, %v2077_v9 }
 0x355   :  { %vm1186_vm15 = vcmp.gt.f32.partialorder %v1111_v19, 0.0  ;;  %v1190_v26 = vmul.f32 0.01, %v1111_v19  ;;  %v1184_v28 = vadd.f32 %v1183_v24, %v2199_v30  ;;  %v1212_v30 = vld [vmem:[#allocation8] ss:$8 sm:$0xf] }
 0x356   :  { %vm1187_vm8 = vcmp.gt.f32.partialorder %v1113_v22, 0.0  ;;  %v1191_v31 = vmul.f32 0.01, %v1113_v22  ;;  %vm1188_vm9 = vcmp.gt.f32.partialorder %v1182_v23, 0.0  ;;  %v1192_v32 = vmul.f32 0.01, %v1182_v23 }
 0x357   :  { %v2369_v33 = vsel %vm1186_vm15, %v1111_v19, %v1190_v26  ;;  %vm1189_vm10 = vcmp.gt.f32.partialorder %v1184_v28, 0.0  ;;  %v1193_v4 = vmul.f32 0.01, %v1184_v28  ;;  %v1221_v34 = vrot.slane %v1212_v30, %v2079_v13 }
 0x358   :  { %1368 = vst [vmem:[#allocation2 + $0x80] sm:$0xff] %v2369_v33  ;;  %v2372_v25 = vsel %vm1187_vm8, %v1113_v22, %v1191_v31  ;;  %v2374_v27 = vsel %vm1188_vm9, %v1182_v23, %v1192_v32  ;;  %1200 = vrot.lane.b32.xlu0 %v2369_v33, %s1962_s26  ;;  %v1225_v38 = vrot.slane %v1212_v30, %v2081_v14  ;;  %v1338_v23 = vld [vmem:[#allocation8 + $0x3] ss:$8 sm:$0xf] }
 0x359   :  { %1369 = vst [vmem:[#allocation2 + $0x88] sm:$0xff] %v2372_v25  ;;  %1370 = vst [vmem:[#allocation2 + $0x90] sm:$0xff] %v2374_v27  ;;  %v2380_v29 = vsel %vm1189_vm10, %v1184_v28, %v1193_v4  ;;  %1202 = vrot.lane.b32.xlu1 %v2372_v25, %s1962_s26  ;;  %v1217_v40 = vrot.slane %v1212_v30, %v2075_v8  ;;  %v1229_v41 = vrot.slane %v1212_v30, %v2077_v9 }
 0x35a   :  { %1371 = vst [vmem:[#allocation2 + $0x98] sm:$0xff] %v2380_v29 }
 0x35c   :  { %1204 = vrot.lane.b32.xlu0 %v2374_v27, %s1962_s26 }
 0x35d   :  { %1206 = vrot.lane.b32.xlu1 %v2380_v29, %s1962_s26 }
 0x360   :  { %1242 = vrot.lane.b32.xlu0 %v2369_v33, %s1960_s23 }
 0x361   :  { %1244 = vrot.lane.b32.xlu1 %v2372_v25, %s1960_s23 }
 0x364   :  { %1246 = vrot.lane.b32.xlu0 %v2374_v27, %s1960_s23 }
 0x365   :  { %1248 = vrot.lane.b32.xlu1 %v2380_v29, %s1960_s23 }
 0x368   :  { %1284 = vrot.lane.b32.xlu0 %v2369_v33, %s1963_s27 }
 0x369   :  { %1286 = vrot.lane.b32.xlu1 %v2372_v25, %s1963_s27 }
 0x36c   :  { %1288 = vrot.lane.b32.xlu0 %v2374_v27, %s1963_s27 }
 0x36d   :  { %1290 = vrot.lane.b32.xlu1 %v2380_v29, %s1963_s27 }
 0x370   :  { %1326 = vrot.lane.b32.xlu0 %v2369_v33, %s1961_s2 }
 0x371   :  { %1328 = vrot.lane.b32.xlu1 %v2372_v25, %s1961_s2 }
 0x374   :  { %1330 = vrot.lane.b32.xlu0 %v2374_v27, %s1961_s2 }
 0x375   :  { %1332 = vrot.lane.b32.xlu1 %v2380_v29, %s1961_s2 }
 0x378   :  { %1372 = vrot.lane.b32.xlu0 %v2369_v33, %s1964_s28 }
 0x379   :  { %1374 = vrot.lane.b32.xlu1 %v2372_v25, %s1964_s28 }
 0x37c   :  { %1376 = vrot.lane.b32.xlu0 %v2374_v27, %s1964_s28 }
 0x37d   :  { %1378 = vrot.lane.b32.xlu1 %v2380_v29, %s1964_s28 }
 0x380   :  { %1414 = vrot.lane.b32.xlu0 %v2369_v33, %s1966_s30 }
 0x381   :  { %1416 = vrot.lane.b32.xlu1 %v2372_v25, %s1966_s30 }
 0x384   :  { %1418 = vrot.lane.b32.xlu0 %v2374_v27, %s1966_s30 }
 0x385   :  { %1420 = vrot.lane.b32.xlu1 %v2380_v29, %s1966_s30 }
 0x388   :  { %1456 = vrot.lane.b32.xlu0 %v2369_v33, %s1965_s29 }
 0x389   :  { %1458 = vrot.lane.b32.xlu1 %v2372_v25, %s1965_s29 }
 0x38c   :  { %1460 = vrot.lane.b32.xlu0 %v2374_v27, %s1965_s29 }
 0x38d   :  { %1462 = vrot.lane.b32.xlu1 %v2380_v29, %s1965_s29 }
 0x390   :  { %1498 = vrot.lane.b32.xlu0 %v2369_v33, %s1967_s4 }
 0x391   :  { %1500 = vrot.lane.b32.xlu1 %v2372_v25, %s1967_s4 }
 0x394   :  { %1502 = vrot.lane.b32.xlu0 %v2374_v27, %s1967_s4 }
 0x395   :  { %1504 = vrot.lane.b32.xlu1 %v2380_v29, %s1967_s4 }
 0x3ca   :  { %v1201_v35 = vpop.permute.xlu0 %1200 }
 0x3cb   :  { %v1203_v36 = vpop.permute.xlu1 %1202 }
 0x3cc   :  { %v1210_v37 = vsel %vm76_vm2, %v1201_v35, %v1203_v36 }
 0x3cd   :  { %v1235_v39 = vmul.f32 %v1221_v34, %v1210_v37  ;;  %v1347_v34 = vrot.slane %v1338_v23, %v2079_v13 }
 0x3ce   :  { %v1205_v42 = vpop.permute.xlu0 %1204 }
 0x3cf   :  { %1239 = vst [vmem:[#allocation2 + $0x8] sm:$0xff] %v1235_v39  ;;  %v1209_v44 = vsel %vm76_vm2, %v1203_v36, %v1205_v42  ;;  %v1207_v45 = vpop.permute.xlu1 %1206 }
 0x3d0   :  { %v1236_v46 = vmul.f32 %v1225_v38, %v1209_v44  ;;  %v1208_v47 = vsel %vm76_vm2, %v1205_v42, %v1207_v45  ;;  %v1211_v48 = vsel %vm76_vm2, %v1207_v45, %v1201_v35  ;;  %v1351_v38 = vrot.slane %v1338_v23, %v2081_v14 }
 0x3d1   :  { %v1234_v49 = vmul.f32 %v1217_v40, %v1211_v48  ;;  %v1237_v50 = vmul.f32 %v1229_v41, %v1208_v47  ;;  %v1343_v40 = vrot.slane %v1338_v23, %v2075_v8  ;;  %v1355_v41 = vrot.slane %v1338_v23, %v2077_v9 }
 0x3d2   :  { %1240 = vst [vmem:[#allocation2 + $0x10] sm:$0xff] %v1236_v46  ;;  %v1243_v52 = vpop.permute.xlu0 %1242 }
 0x3d3   :  { %1238 = vst [vmem:[#allocation2] sm:$0xff] %v1234_v49  ;;  %1241 = vst [vmem:[#allocation2 + $0x18] sm:$0xff] %v1237_v50  ;;  %v1245_v53 = vpop.permute.xlu1 %1244 }
 0x3d4   :  { %v1252_v54 = vsel %vm119_vm0, %v1243_v52, %v1245_v53 }
 0x3d5   :  { %v1277_v56 = vmul.f32 %v1263_v51, %v1252_v54 }
 0x3d6   :  { %v1247_v59 = vpop.permute.xlu0 %1246 }
 0x3d7   :  { %1281 = vst [vmem:[#allocation2 + $0x28] sm:$0xff] %v1277_v56  ;;  %v1251_v61 = vsel %vm119_vm0, %v1245_v53, %v1247_v59  ;;  %v1249_v62 = vpop.permute.xlu1 %1248  ;;  %v1808_v63 = vpack.c.bf16 %v1277_v56, %v1235_v39 }
 0x3d8   :  { %v1278_v0 = vmul.f32 %v1267_v55, %v1251_v61  ;;  %v1250_v1 = vsel %vm119_vm0, %v1247_v59, %v1249_v62  ;;  %v1253_v2 = vsel %vm119_vm0, %v1249_v62, %v1243_v52  ;;  %v1389_v52 = vrot.slane %v1384_v43, %v2075_v8 }
 0x3d9   :  { %v1276_v3 = vmul.f32 %v1259_v57, %v1253_v2  ;;  %v1279_v5 = vmul.f32 %v1271_v58, %v1250_v1  ;;  %1809 = vmatprep.subr.bf16.mxu0 %v1808_v63  ;;  %v1393_v58 = vrot.slane %v1384_v43, %v2079_v13  ;;  %v1397_v61 = vrot.slane %v1384_v43, %v2081_v14 }
 0x3da   :  { %1282 = vst [vmem:[#allocation2 + $0x30] sm:$0xff] %v1278_v0  ;;  %v1285_v10 = vpop.permute.xlu0 %1284  ;;  %v1826_v18 = vpack.c.bf16 %v1278_v0, %v1236_v46  ;;  %v1401_v62 = vrot.slane %v1384_v43, %v2077_v9  ;;  %v1426_v0 = vld [vmem:[#allocation8 + $0x6] ss:$8 sm:$0xf] }
 0x3db   :  { %1280 = vst [vmem:[#allocation2 + $0x20] sm:$0xff] %v1276_v3  ;;  %1283 = vst [vmem:[#allocation2 + $0x38] sm:$0xff] %v1279_v5  ;;  %v1287_v11 = vpop.permute.xlu1 %1286  ;;  %v1810_v12 = vpack.c.bf16 %v1276_v3, %v1234_v49  ;;  %v1824_v15 = vpack.c.bf16 %v1279_v5, %v1237_v50  ;;  %v1510_v43 = vld [vmem:[#allocation8 + $0x20] ss:$8 sm:$0xf] }
 0x3dc   :  { %v1294_v16 = vsel %vm175_vm3, %v1285_v10, %v1287_v11 }
 0x3dd   :  { %v1319_v19 = vmul.f32 %v1305_v6, %v1294_v16  ;;  %1811 = vmatpush1.bf16.msra.mxu0 %v1810_v12  ;;  %1825 = vmatprep.subr.bf16.mxu1 %v1824_v15  ;;  %v1431_v12 = vrot.slane %v1426_v0, %v2075_v8 }
 0x3de   :  { %v1289_v22 = vpop.permute.xlu0 %1288  ;;  %1827 = vmatpush1.bf16.msra.mxu1 %v1826_v18 }
 0x3df   :  { %1323 = vst [vmem:[#allocation2 + $0x48] sm:$0xff] %v1319_v19  ;;  %v1293_v24 = vsel %vm175_vm3, %v1287_v11, %v1289_v22  ;;  %v1291_v26 = vpop.permute.xlu1 %1290 }
 0x3e0   :  { %v1320_v28 = vmul.f32 %v1309_v17, %v1293_v24  ;;  %v1292_v31 = vsel %vm175_vm3, %v1289_v22, %v1291_v26  ;;  %v1295_v32 = vsel %vm175_vm3, %v1291_v26, %v1285_v10  ;;  %v1435_v22 = vrot.slane %v1426_v0, %v2079_v13 }
 0x3e1   :  { %v1318_v4 = vmul.f32 %v1301_v20, %v1295_v32  ;;  %v1321_v30 = vmul.f32 %v1313_v21, %v1292_v31  ;;  %v1439_v24 = vrot.slane %v1426_v0, %v2081_v14  ;;  %v1443_v26 = vrot.slane %v1426_v0, %v2077_v9 }
 0x3e2   :  { %1324 = vst [vmem:[#allocation2 + $0x50] sm:$0xff] %v1320_v28  ;;  %v1327_v35 = vpop.permute.xlu0 %1326 }
 0x3e3   :  { %1322 = vst [vmem:[#allocation2 + $0x40] sm:$0xff] %v1318_v4  ;;  %1325 = vst [vmem:[#allocation2 + $0x58] sm:$0xff] %v1321_v30  ;;  %v1329_v36 = vpop.permute.xlu1 %1328 }
 0x3e4   :  { %v1336_v37 = vsel %vm219_vm1, %v1327_v35, %v1329_v36 }
 0x3e5   :  { %v1361_v39 = vmul.f32 %v1347_v34, %v1336_v37 }
 0x3e6   :  { %v1331_v42 = vpop.permute.xlu0 %1330 }
 0x3e7   :  { %1365 = vst [vmem:[#allocation2 + $0x68] sm:$0xff] %v1361_v39  ;;  %v1335_v44 = vsel %vm219_vm1, %v1329_v36, %v1331_v42  ;;  %v1333_v45 = vpop.permute.xlu1 %1332  ;;  %v1812_v46 = vpack.c.bf16 %v1361_v39, %v1319_v19 }
 0x3e8   :  { %v1362_v47 = vmul.f32 %v1351_v38, %v1335_v44  ;;  %v1334_v48 = vsel %vm219_vm1, %v1331_v42, %v1333_v45  ;;  %v1337_v49 = vsel %vm219_vm1, %v1333_v45, %v1327_v35 }
 0x3e9   :  { %v1360_v50 = vmul.f32 %v1343_v40, %v1337_v49  ;;  %v1363_v51 = vmul.f32 %v1355_v41, %v1334_v48  ;;  %1813 = vmatprep.subr.bf16.mxu0 %v1812_v46 }
 0x3ea   :  { %1366 = vst [vmem:[#allocation2 + $0x70] sm:$0xff] %v1362_v47  ;;  %v1373_v53 = vpop.permute.xlu0 %1372  ;;  %v1830_v59 = vpack.c.bf16 %v1362_v47, %v1320_v28  ;;  %v1468_v28 = vld [vmem:[#allocation8 + $0x7] ss:$8 sm:$0xf] }
 0x3eb   :  { %1364 = vst [vmem:[#allocation2 + $0x60] sm:$0xff] %v1360_v50  ;;  %1367 = vst [vmem:[#allocation2 + $0x78] sm:$0xff] %v1363_v51  ;;  %v1375_v54 = vpop.permute.xlu1 %1374  ;;  %v1814_v55 = vpack.c.bf16 %v1360_v50, %v1318_v4  ;;  %v1828_v56 = vpack.c.bf16 %v1363_v51, %v1321_v30  ;;  %v1473_v34 = vrot.slane %v1468_v28, %v2075_v8 }
 0x3ec   :  { %v1382_v57 = vsel %vm279_vm4, %v1373_v53, %v1375_v54  ;;  %v1477_v38 = vrot.slane %v1468_v28, %v2079_v13  ;;  %v1481_v40 = vrot.slane %v1468_v28, %v2081_v14  ;;  %v1485_v41 = vrot.slane %v1468_v28, %v2077_v9 }
 0x3ed   :  { %v1406_v60 = vmul.f32 %v1389_v52, %v1382_v57  ;;  %1815 = vmatpush1.bf16.msra.mxu0 %v1814_v55  ;;  %1829 = vmatprep.subr.bf16.mxu1 %v1828_v56  ;;  %v1515_v51 = vrot.slane %v1510_v43, %v2075_v8 }
 0x3ee   :  { %v1377_v63 = vpop.permute.xlu0 %1376  ;;  %1831 = vmatpush1.bf16.msra.mxu1 %v1830_v59  ;;  %v1519_v59 = vrot.slane %v1510_v43, %v2079_v13 }
 0x3ef   :  { %v1381_v1 = vsel %vm279_vm4, %v1375_v54, %v1377_v63  ;;  %v1379_v2 = vpop.permute.xlu1 %1378  ;;  %v1818_v18 = vpack.c.bf16 %v1406_v60, %v2369_v33 }
 0x3f0   :  { %v1407_v3 = vmul.f32 %v1393_v58, %v1381_v1  ;;  %v1380_v5 = vsel %vm279_vm4, %v1377_v63, %v1379_v2  ;;  %v1383_v6 = vsel %vm279_vm4, %v1379_v2, %v1373_v53 }
 0x3f1   :  { %v1408_v10 = vmul.f32 %v1397_v61, %v1380_v5  ;;  %v1409_v11 = vmul.f32 %v1401_v62, %v1383_v6  ;;  %v1523_v61 = vrot.slane %v1510_v43, %v2081_v14  ;;  %v1527_v62 = vrot.slane %v1510_v43, %v2077_v9  ;;  %v1199_v14 = vld [vmem:[#allocation6 + $0x10] sm:$0xf] }
 0x3f2   :  { %v1415_v15 = vpop.permute.xlu0 %1414  ;;  %v1816_v16 = vpack.c.bf16 %v1407_v3, %v2372_v25 }
 0x3f3   :  { %v1417_v17 = vpop.permute.xlu1 %1416  ;;  %v1832_v19 = vpack.c.bf16 %v1409_v11, %v2380_v29  ;;  %v1834_v20 = vpack.c.bf16 %v1408_v10, %v2374_v27 }
 0x3f4   :  { %v1424_v21 = vsel %vm335_vm6, %v1415_v15, %v1417_v17  ;;  %1817 = vmatprep.subr.bf16.mxu0 %v1816_v16 }
 0x3f5   :  { %v1448_v23 = vmul.f32 %v1431_v12, %v1424_v21  ;;  %1819 = vmatpush1.bf16.msra.mxu0 %v1818_v18  ;;  %1833 = vmatprep.subr.bf16.mxu1 %v1832_v19 }
 0x3f6   :  { %v1419_v25 = vpop.permute.xlu0 %1418  ;;  %1835 = vmatpush1.bf16.msra.mxu1 %v1834_v20 }
 0x3f7   :  { %v1423_v33 = vsel %vm335_vm6, %v1417_v17, %v1419_v25  ;;  %v1421_v27 = vpop.permute.xlu1 %1420 }
 0x3f8   :  { %v1449_v29 = vmul.f32 %v1435_v22, %v1423_v33  ;;  %v1422_v31 = vsel %vm335_vm6, %v1419_v25, %v1421_v27  ;;  %v1425_v32 = vsel %vm335_vm6, %v1421_v27, %v1415_v15 }
 0x3f9   :  { %v1450_v4 = vmul.f32 %v1439_v24, %v1422_v31  ;;  %v1451_v30 = vmul.f32 %v1443_v26, %v1425_v32 }
 0x3fa   :  { %v1457_v35 = vpop.permute.xlu0 %1456 }
 0x3fb   :  { %v1459_v36 = vpop.permute.xlu1 %1458 }
 0x3fc   :  { %v1466_v37 = vsel %vm379_vm5, %v1457_v35, %v1459_v36 }
 0x3fd   :  { %v1490_v39 = vmul.f32 %v1473_v34, %v1466_v37 }
 0x3fe   :  { %v1461_v42 = vpop.permute.xlu0 %1460 }
 0x3ff   :  { %v1465_v44 = vsel %vm379_vm5, %v1459_v36, %v1461_v42  ;;  %v1463_v45 = vpop.permute.xlu1 %1462  ;;  %v1822_v55 = vpack.c.bf16 %v1490_v39, %v1448_v23 }
 0x400   :  { %v1491_v46 = vmul.f32 %v1477_v38, %v1465_v44  ;;  %v1464_v47 = vsel %vm379_vm5, %v1461_v42, %v1463_v45  ;;  %v1467_v48 = vsel %vm379_vm5, %v1463_v45, %v1457_v35 }
 0x401   :  { %v1492_v49 = vmul.f32 %v1481_v40, %v1464_v47  ;;  %v1493_v50 = vmul.f32 %v1485_v41, %v1467_v48 }
 0x402   :  { %v1499_v52 = vpop.permute.xlu0 %1498  ;;  %v1820_v53 = vpack.c.bf16 %v1491_v46, %v1449_v29 }
 0x403   :  { %v1501_v54 = vpop.permute.xlu1 %1500  ;;  %v1836_v56 = vpack.c.bf16 %v1493_v50, %v1451_v30  ;;  %v1838_v57 = vpack.c.bf16 %v1492_v49, %v1450_v4 }
 0x404   :  { %v1508_v58 = vsel %vm435_vm7, %v1499_v52, %v1501_v54  ;;  %1821 = vmatprep.subr.bf16.mxu0 %v1820_v53 }
 0x405   :  { %v1532_v60 = vmul.f32 %v1515_v51, %v1508_v58  ;;  %1823 = vmatpush1.bf16.msra.mxu0 %v1822_v55  ;;  %1837 = vmatprep.subr.bf16.mxu1 %v1836_v56 }
 0x406   :  { %v1503_v8 = vpop.permute.xlu0 %1502  ;;  %1839 = vmatpush1.bf16.msra.mxu1 %v1838_v57 }
 0x407   :  { %v1507_v63 = vsel %vm435_vm7, %v1501_v54, %v1503_v8  ;;  %v1505_v0 = vpop.permute.xlu1 %1504 }
 0x408   :  { %v1533_v1 = vmul.f32 %v1519_v59, %v1507_v63  ;;  %v1506_v2 = vsel %vm435_vm7, %v1503_v8, %v1505_v0  ;;  %v1509_v13 = vsel %vm435_vm7, %v1505_v0, %v1499_v52 }
 0x409   :  { %v1534_v3 = vmul.f32 %v1523_v61, %v1506_v2  ;;  %v1535_v5 = vmul.f32 %v1527_v62, %v1509_v13 }
 0x40a   :  { %1595 = vmatprep.subr.mxu0 %v1533_v1 }
 0x40b   :  { %1596 = vmatpush1.msra.mxu0 %v1532_v60  ;;  %1666 = vmatprep.subr.mxu1 %v1535_v5 }
 0x40c   :  { %1758 = vmatmul.mubr.msk.f32.vlgmr.msra.gmra.mrb[4].mxu0 %vm1040_vm14, %v1199_v14  ;;  %1667 = vmatpush1.msra.mxu1 %v1534_v3 }
 0x40d   :  { %1759 = vmatmul.mubr.msk.f32.vlgmr.msra.gmra.mrb[4].mxu1 %vm1040_vm14, %v1199_v14 }
 0x4df   :  { %v1645_v9 = vpop.f32.mrb[4].mxu0 }
 0x4e0   :  { %v1647_v6 = vpop.f32.mrb[5].mxu0  ;;  %v1716_v10 = vpop.f32.mrb[4].mxu1 }
 0x4e1   :  { %v1723_v11 = vcombine.low %v1645_v9, %v1647_v6  ;;  %v1718_v12 = vpop.f32.mrb[5].mxu1 }
 0x4e2   :  { %v1728_v7 = vcombine.low %v1716_v10, %v1718_v12 }
 0x4e3   :  { %1725 = vst [vmem:[#allocation9] sm:$0xff] %v1723_v11 }
 0x4e4   :  { %1731 = vst [vmem:[#allocation9 + $0x8] sm:$0xff] %v1728_v7 }
 0x4e5   :  { %1936 = shalt.err (!%p1933_p0)
}
 0x4e6   :  { %s1937_s9 = scalar_lea.hbm %s2565_s3, 256 }
 0x4e7   :  { %p1938_p1 = scmp.ne.s32.totalorder %s2565_s3, %s1937_s9  ;;  %p1941_p2 = scmp.lt.u32.totalorder %s1937_s9, %s2565_s3 }
 0x4e9   :  { %p1943_p3 = pnand %p1941_p2, %p1938_p1 }
 0x4eb   :  { %1946 = shalt.err (!%p1943_p3)
}
 0x4ec   :  { %1743 = dma.vmem_to_hbm [thread:$0]  %s1738_s6, 256, %s2565_s3, [#allocation5], %s1955_s24, %s1955_s24, %s1956_s25  }
 0x4ed   :  { %1951 = dma.done.wait [#allocation5], 256  }
 0x4ee   :  { %1952 = vsyncadd [#allocation5], 4294967040 }
 0x4ef   :  { %1747 = vsyncpa [#allocation4], 1 }
 0x4f0   :  { %1748 = vsyncpa [#allocation7], 1 }
 0x4f1   :  { %1749 = vsyncpa [#allocation5], 1 }

</bundles_post_ra>
